<compile_context>
chip_gen: v5e
topology: v5e:2x2
jax: 0.10.0
libtpu: 0.0.40
codegen_flags: <defaults>
</compile_context>

<pallas_src>
import math
import jax
import jax.numpy as jnp
from jax.experimental import pallas as pl
from jax.experimental.pallas import tpu as pltpu

# ---- small synthetic config (stand-in for bert-base-uncased) ----
VOCAB = 100
TYPE_VOCAB = 2
MAX_POS = 16
H = 32            # hidden size      (bert-base: 768)
NH = 2            # attention heads  (bert-base: 12)
HD = H // NH
FFN = 64          # intermediate     (bert-base: 3072)
LAYERS = 2
LN_EPS = 1e-12
B, S = 2, 8       # batch, sequence length

# ---- packed-slab layouts (all slices sublane-aligned, lane offsets = 0) ----
# mats[l] rows:  [0:H)      -> W_qkv [H, 3H]  (cols = q|k|v, head-major inside)
#                [H:2H)     -> W_o   [H, H]
#                [2H:3H)    -> W_1   [H, FFN]
#                [3H:3H+FFN)-> W_2   [FFN, H]
R_QKV, R_WO, R_W1, R_W2 = 0, H, 2 * H, 3 * H
MAT_ROWS, MAT_COLS = 3 * H + FFN, 3 * H
# vecs[l] rows (each padded to 128 lanes):
V_BQKV, V_BO, V_B1, V_B2, V_LN1G, V_LN1B, V_LN2G, V_LN2B = range(8)
VEC_ROWS, VEC_LANES = 8, 128
# misc rows:
M_EG, M_EB, M_HWA, M_HWM, M_HB = range(5)
MISC_ROWS = 8


def _full_spec(shape):
    nd = len(shape)
    return pl.BlockSpec(shape, lambda *_: (0,) * nd)


# ---------------- fully fused Pallas kernel ----------------

def fused_model_kernel(emb_ref, bias_ref, mats_ref, vecs_ref, misc_ref, o_ref):
    """emb-LN -> L x (fused-QKV MHSA + LN, FFN + LN) -> mean/max pool -> linear -> sigmoid."""

    def layernorm(x, g, b):
        mu = jnp.mean(x, axis=-1, keepdims=True)
        var = jnp.mean((x - mu) ** 2, axis=-1, keepdims=True)
        return (x - mu) * jax.lax.rsqrt(var + LN_EPS) * g + b

    inv_sqrt_hd = 1.0 / math.sqrt(HD)
    bias = bias_ref[...]                                   # [B, 1, S], reused every layer

    # embedding LayerNorm; activations kept as [B*S, H] throughout
    x = layernorm(emb_ref[...],
                  misc_ref[M_EG:M_EG + 1, :H],
                  misc_ref[M_EB:M_EB + 1, :H])             # [B*S, H]

    for l in range(LAYERS):                                # static unroll (LAYERS = 2)
        # ---- one fused QKV projection per layer ----
        wqkv = mats_ref[l, R_QKV:R_QKV + H, :3 * H]        # [H, 3H]
        bqkv = vecs_ref[l, V_BQKV:V_BQKV + 1, :3 * H]      # [1, 3H]
        qkv = jnp.dot(x, wqkv, preferred_element_type=jnp.float32) + bqkv   # [B*S, 3H]

        # ---- multi-head self-attention (heads = static lane slices) ----
        attn = None
        for h in range(NH):                                # static unroll (NH = 2)
            q = qkv[:, h * HD:(h + 1) * HD].reshape(B, S, HD)
            k = qkv[:, H + h * HD:H + (h + 1) * HD].reshape(B, S, HD)
            v = qkv[:, 2 * H + h * HD:2 * H + (h + 1) * HD].reshape(B, S, HD)
            s = jnp.einsum('bqd,bkd->bqk', q, k,
                           preferred_element_type=jnp.float32) * inv_sqrt_hd
            s = s + bias                                   # BERT-style additive mask
            p = jax.nn.softmax(s, axis=-1)
            ctx = jnp.einsum('bqk,bkd->bqd', p, v,
                             preferred_element_type=jnp.float32)          # [B, S, HD]
            wo_h = mats_ref[l, R_WO + h * HD:R_WO + (h + 1) * HD, :H]     # [HD, H]
            contrib = jnp.dot(ctx.reshape(B * S, HD), wo_h,
                              preferred_element_type=jnp.float32)
            if attn is None:      # first head initializes accumulator, folds in bias
                attn = contrib + vecs_ref[l, V_BO:V_BO + 1, :H]
            else:
                attn = attn + contrib
        x = layernorm(attn + x,
                      vecs_ref[l, V_LN1G:V_LN1G + 1, :H],
                      vecs_ref[l, V_LN1B:V_LN1B + 1, :H])  # Add & LN (fused)

        # ---- feed-forward ----
        w1 = mats_ref[l, R_W1:R_W1 + H, :FFN]
        w2 = mats_ref[l, R_W2:R_W2 + FFN, :H]
        h1 = jnp.dot(x, w1, preferred_element_type=jnp.float32) \
            + vecs_ref[l, V_B1:V_B1 + 1, :FFN]
        # TODO(synk): bert-base uses erf-GELU; tanh-approximate GELU used for robust Mosaic lowering.
        h1 = jax.nn.gelu(h1, approximate=True)
        ff = jnp.dot(h1, w2, preferred_element_type=jnp.float32) \
            + vecs_ref[l, V_B2:V_B2 + 1, :H]
        x = layernorm(ff + x,
                      vecs_ref[l, V_LN2G:V_LN2G + 1, :H],
                      vecs_ref[l, V_LN2B:V_LN2B + 1, :H])  # Add & LN (fused)

    # ---- pooling head: mean + max over seq (incl. padded positions, matches torch.mean/max) ----
    h3 = x.reshape(B, S, H)                                # tile-aligned view (16 rows -> 2x8)
    apool = jnp.mean(h3, axis=1)                           # torch.mean(last_hidden, dim=1)
    mpool = jnp.max(h3, axis=1)                            # torch.max(last_hidden, dim=1)[0]
    # dropout(p=0.5) is identity in eval mode; no lane concat: two lane-reductions instead
    logit = (jnp.sum(apool * misc_ref[M_HWA:M_HWA + 1, :H], axis=-1, keepdims=True)
             + jnp.sum(mpool * misc_ref[M_HWM:M_HWM + 1, :H], axis=-1, keepdims=True)
             + misc_ref[M_HB:M_HB + 1, 0:1])
    o_ref[...] = jax.nn.sigmoid(logit)                     # [B, 1]


# ---------------- parameter init (deterministic, synthetic) ----------------

def init_params(key):
    def nrm(k, shape, scale=0.02):
        return scale * jax.random.normal(k, shape, dtype=jnp.float32)

    keys = jax.random.split(key, 8 + LAYERS * 8)
    it = iter(keys)
    params = {
        "word_emb": nrm(next(it), (VOCAB, H)),
        "pos_emb": nrm(next(it), (MAX_POS, H)),
        "type_emb": nrm(next(it), (TYPE_VOCAB, H)),
        "emb_ln_g": jnp.ones((H,), jnp.float32),
        "emb_ln_b": jnp.zeros((H,), jnp.float32),
        "head_w": nrm(next(it), (2 * H, 1)),
        "head_b": jnp.zeros((1,), jnp.float32),
        "layers": [],
    }
    for _ in range(LAYERS):
        layer = {
            "wq": nrm(next(it), (H, H)), "bq": jnp.zeros((H,), jnp.float32),
            "wk": nrm(next(it), (H, H)), "bk": jnp.zeros((H,), jnp.float32),
            "wv": nrm(next(it), (H, H)), "bv": jnp.zeros((H,), jnp.float32),
            "wo": nrm(next(it), (H, H)), "bo": jnp.zeros((H,), jnp.float32),
            "w1": nrm(next(it), (H, FFN)), "b1": jnp.zeros((FFN,), jnp.float32),
            "w2": nrm(next(it), (FFN, H)), "b2": jnp.zeros((H,), jnp.float32),
            "ln1_g": jnp.ones((H,), jnp.float32), "ln1_b": jnp.zeros((H,), jnp.float32),
            "ln2_g": jnp.ones((H,), jnp.float32), "ln2_b": jnp.zeros((H,), jnp.float32),
        }
        params["layers"].append(layer)
    return params


def pack_params(p):
    """Consolidate all weights into three VMEM-friendly slabs (5 DMAs total per forward)."""
    mats = jnp.zeros((LAYERS, MAT_ROWS, MAT_COLS), jnp.float32)
    vecs = jnp.zeros((LAYERS, VEC_ROWS, VEC_LANES), jnp.float32)
    for l, lp in enumerate(p["layers"]):
        wqkv = jnp.concatenate([lp["wq"], lp["wk"], lp["wv"]], axis=1)      # [H, 3H]
        mats = mats.at[l, R_QKV:R_QKV + H, 0:3 * H].set(wqkv)
        mats = mats.at[l, R_WO:R_WO + H, 0:H].set(lp["wo"])
        mats = mats.at[l, R_W1:R_W1 + H, 0:FFN].set(lp["w1"])
        mats = mats.at[l, R_W2:R_W2 + FFN, 0:H].set(lp["w2"])
        vecs = vecs.at[l, V_BQKV, 0:3 * H].set(
            jnp.concatenate([lp["bq"], lp["bk"], lp["bv"]]))
        vecs = vecs.at[l, V_BO, 0:H].set(lp["bo"])
        vecs = vecs.at[l, V_B1, 0:FFN].set(lp["b1"])
        vecs = vecs.at[l, V_B2, 0:H].set(lp["b2"])
        vecs = vecs.at[l, V_LN1G, 0:H].set(lp["ln1_g"])
        vecs = vecs.at[l, V_LN1B, 0:H].set(lp["ln1_b"])
        vecs = vecs.at[l, V_LN2G, 0:H].set(lp["ln2_g"])
        vecs = vecs.at[l, V_LN2B, 0:H].set(lp["ln2_b"])
    misc = jnp.zeros((MISC_ROWS, VEC_LANES), jnp.float32)
    misc = misc.at[M_EG, 0:H].set(p["emb_ln_g"])
    misc = misc.at[M_EB, 0:H].set(p["emb_ln_b"])
    misc = misc.at[M_HWA, 0:H].set(p["head_w"][:H, 0])      # weights applied to mean-pool
    misc = misc.at[M_HWM, 0:H].set(p["head_w"][H:, 0])      # weights applied to max-pool
    misc = misc.at[M_HB, 0].set(p["head_b"][0])
    return {
        "word_emb": p["word_emb"], "pos_emb": p["pos_emb"], "type_emb": p["type_emb"],
        "mats": mats, "vecs": vecs, "misc": misc,
    }


# ---------------- forward pass ----------------

def recommendation_forward(packed, input_ids, token_type_ids, attention_mask):
    # --- embeddings (gather = plain-JAX glue; tiny tables, no clean Pallas gather) ---
    positions = jnp.arange(S, dtype=jnp.int32)
    emb = (jnp.take(packed["word_emb"], input_ids, axis=0)
           + jnp.take(packed["pos_emb"], positions, axis=0)[None, :, :]
           + jnp.take(packed["type_emb"], token_type_ids, axis=0))
    emb2 = emb.reshape(B * S, H).astype(jnp.float32)

    # additive attention-mask bias computed ONCE per forward, reused by all layers/heads
    bias = ((1.0 - attention_mask.astype(jnp.float32)) * -10000.0).reshape(B, 1, S)

    args = (emb2, bias, packed["mats"], packed["vecs"], packed["misc"])

    return pl.pallas_call(
        fused_model_kernel,
        out_shape=jax.ShapeDtypeStruct((B, 1), jnp.float32),
        grid=(1,),
        in_specs=[_full_spec(a.shape) for a in args],
        out_specs=_full_spec((B, 1)),
        compiler_params=pltpu.CompilerParams(dimension_semantics=("arbitrary",)),
    )(*args)


if __name__ == "__main__":
    key = jax.random.PRNGKey(0)
    k_ids, k_params = jax.random.split(key)

    input_ids = jax.random.randint(k_ids, (B, S), 0, VOCAB, dtype=jnp.int32)
    token_type_ids = jnp.zeros((B, S), dtype=jnp.int32)
    attention_mask = jnp.ones((B, S), dtype=jnp.int32).at[1, 6:].set(0)

    params = init_params(k_params)
    packed = pack_params(params)

    fwd = jax.jit(recommendation_forward)
    out = fwd(packed, input_ids, token_type_ids, attention_mask)
    out = jax.block_until_ready(out)

    assert out.shape == (B, 1), out.shape
    assert bool(jnp.all((out >= 0.0) & (out <= 1.0)))
    print("KERNEL_OK")
</pallas_src>

<mosaic_0001>
module attributes {stable_mosaic.version = 11 : i64} {
  func.func @fused_model_kernel(%arg0: i32, %arg1: memref<16x32xf32, #tpu.memory_space<vmem>>, %arg2: memref<2x1x8xf32, #tpu.memory_space<vmem>>, %arg3: memref<2x160x96xf32, #tpu.memory_space<vmem>>, %arg4: memref<2x8x128xf32, #tpu.memory_space<vmem>>, %arg5: memref<8x128xf32, #tpu.memory_space<vmem>>, %arg6: memref<2x1xf32, #tpu.memory_space<vmem>>) attributes {dimension_semantics = [#tpu.dimension_semantics<arbitrary>], iteration_bounds = array<i64: 1>, scalar_prefetch = 0 : i64, scratch_operands = 0 : i64, tpu.core_type = #tpu.core_type<tc>, window_params = [{pipeline_mode = #tpu.pipeline_mode<synchronous>, transform_indices = @transform_0, window_bounds = array<i64: 16, 32>}, {pipeline_mode = #tpu.pipeline_mode<synchronous>, transform_indices = @transform_1, window_bounds = array<i64: 2, 1, 8>}, {pipeline_mode = #tpu.pipeline_mode<synchronous>, transform_indices = @transform_2, window_bounds = array<i64: 2, 160, 96>}, {pipeline_mode = #tpu.pipeline_mode<synchronous>, transform_indices = @transform_3, window_bounds = array<i64: 2, 8, 128>}, {pipeline_mode = #tpu.pipeline_mode<synchronous>, transform_indices = @transform_4, window_bounds = array<i64: 8, 128>}, {pipeline_mode = #tpu.pipeline_mode<synchronous>, transform_indices = @transform_5, window_bounds = array<i64: 2, 1>}]} {
    %c0 = arith.constant 0 : index
    %c0_0 = arith.constant 0 : index
    %c0_1 = arith.constant 0 : index
    %0 = vector.load %arg2[%c0, %c0_0, %c0_1] : memref<2x1x8xf32, #tpu.memory_space<vmem>>, vector<2x1x8xf32>
    %c0_2 = arith.constant 0 : index
    %c0_3 = arith.constant 0 : index
    %1 = vector.load %arg1[%c0_2, %c0_3] : memref<16x32xf32, #tpu.memory_space<vmem>>, vector<16x32xf32>
    %c0_4 = arith.constant 0 : index
    %c0_5 = arith.constant 0 : index
    %2 = vector.load %arg5[%c0_4, %c0_5] : memref<8x128xf32, #tpu.memory_space<vmem>>, vector<1x32xf32>
    %c1 = arith.constant 1 : index
    %c0_6 = arith.constant 0 : index
    %3 = vector.load %arg5[%c1, %c0_6] : memref<8x128xf32, #tpu.memory_space<vmem>>, vector<1x32xf32>
    %cst = arith.constant dense<0.000000e+00> : vector<16xf32>
    %4 = vector.multi_reduction <add>, %1, %cst [1] : vector<16x32xf32> to vector<16xf32>
    %5 = vector.shape_cast %4 : vector<16xf32> to vector<16x1xf32>
    %cst_7 = arith.constant 3.200000e+01 : f32
    %6 = vector.broadcast %cst_7 : f32 to vector<16x1xf32>
    %7 = arith.divf %5, %6 : vector<16x1xf32>
    %8 = vector.broadcast %7 : vector<16x1xf32> to vector<16x32xf32>
    %9 = arith.subf %1, %8 : vector<16x32xf32>
    %10 = arith.mulf %9, %9 : vector<16x32xf32>
    %cst_8 = arith.constant dense<0.000000e+00> : vector<16xf32>
    %11 = vector.multi_reduction <add>, %10, %cst_8 [1] : vector<16x32xf32> to vector<16xf32>
    %12 = vector.shape_cast %11 : vector<16xf32> to vector<16x1xf32>
    %cst_9 = arith.constant 3.200000e+01 : f32
    %13 = vector.broadcast %cst_9 : f32 to vector<16x1xf32>
    %14 = arith.divf %12, %13 : vector<16x1xf32>
    %15 = vector.broadcast %7 : vector<16x1xf32> to vector<16x32xf32>
    %16 = arith.subf %1, %15 : vector<16x32xf32>
    %cst_10 = arith.constant 9.99999996E-13 : f32
    %17 = vector.broadcast %cst_10 : f32 to vector<16x1xf32>
    %18 = arith.addf %14, %17 : vector<16x1xf32>
    %19 = math.rsqrt %18 : vector<16x1xf32>
    %20 = vector.broadcast %19 : vector<16x1xf32> to vector<16x32xf32>
    %21 = arith.mulf %16, %20 : vector<16x32xf32>
    %22 = vector.broadcast %2 : vector<1x32xf32> to vector<16x32xf32>
    %23 = arith.mulf %21, %22 : vector<16x32xf32>
    %24 = vector.broadcast %3 : vector<1x32xf32> to vector<16x32xf32>
    %25 = arith.addf %23, %24 : vector<16x32xf32>
    %c0_11 = arith.constant 0 : index
    %c0_12 = arith.constant 0 : index
    %c0_13 = arith.constant 0 : index
    %26 = vector.load %arg3[%c0_11, %c0_12, %c0_13] : memref<2x160x96xf32, #tpu.memory_space<vmem>>, vector<1x32x96xf32>
    %27 = vector.shape_cast %26 : vector<1x32x96xf32> to vector<32x96xf32>
    %c0_14 = arith.constant 0 : index
    %c0_15 = arith.constant 0 : index
    %c0_16 = arith.constant 0 : index
    %28 = vector.load %arg4[%c0_14, %c0_15, %c0_16] : memref<2x8x128xf32, #tpu.memory_space<vmem>>, vector<1x1x96xf32>
    %29 = vector.shape_cast %28 : vector<1x1x96xf32> to vector<1x96xf32>
    %cst_17 = arith.constant dense<0.000000e+00> : vector<16x96xf32>
    %30 = tpu.matmul %25, %27, %cst_17 {dimension_numbers = #tpu.dot_dimension_numbers<[1], [0], [0], [1], [0, 0, 1, 1], [], []>} : vector<16x32xf32>, vector<32x96xf32>, vector<16x96xf32> -> vector<16x96xf32>
    %31 = vector.broadcast %29 : vector<1x96xf32> to vector<16x96xf32>
    %32 = arith.addf %30, %31 : vector<16x96xf32>
    %33 = vector.extract_strided_slice %32 {offsets = [0, 0], sizes = [16, 16], strides = [1, 1]} : vector<16x96xf32> to vector<16x16xf32>
    %34 = vector.shape_cast %33 : vector<16x16xf32> to vector<2x8x16xf32>
    %35 = vector.extract_strided_slice %32 {offsets = [0, 32], sizes = [16, 16], strides = [1, 1]} : vector<16x96xf32> to vector<16x16xf32>
    %36 = vector.shape_cast %35 : vector<16x16xf32> to vector<2x8x16xf32>
    %37 = vector.extract_strided_slice %32 {offsets = [0, 64], sizes = [16, 16], strides = [1, 1]} : vector<16x96xf32> to vector<16x16xf32>
    %38 = vector.shape_cast %37 : vector<16x16xf32> to vector<2x8x16xf32>
    "tpu.trace_start"() <{level = 10 : i32, message = "bqd,bkd->bqk"}> : () -> ()
    %cst_18 = arith.constant dense<0.000000e+00> : vector<2x8x8xf32>
    %39 = tpu.matmul %34, %36, %cst_18 {dimension_numbers = #tpu.dot_dimension_numbers<[2], [2], [1], [1], [0, 0, 0, 1, 1, 1], [0], [0]>} : vector<2x8x16xf32>, vector<2x8x16xf32>, vector<2x8x8xf32> -> vector<2x8x8xf32>
    "tpu.trace_stop"() : () -> ()
    %cst_19 = arith.constant 2.500000e-01 : f32
    %40 = vector.broadcast %cst_19 : f32 to vector<2x8x8xf32>
    %41 = arith.mulf %39, %40 : vector<2x8x8xf32>
    %42 = vector.broadcast %0 : vector<2x1x8xf32> to vector<2x8x8xf32>
    %43 = arith.addf %41, %42 : vector<2x8x8xf32>
    %cst_20 = arith.constant dense<0xFF800000> : vector<2x8xf32>
    %44 = vector.multi_reduction <maximumf>, %43, %cst_20 [2] : vector<2x8x8xf32> to vector<2x8xf32>
    %cst_21 = arith.constant 0xFF800000 : f32
    %45 = vector.broadcast %cst_21 : f32 to vector<2x8xf32>
    %46 = arith.maximumf %45, %44 : vector<2x8xf32>
    %47 = vector.shape_cast %46 : vector<2x8xf32> to vector<2x8x1xf32>
    %48 = vector.broadcast %47 : vector<2x8x1xf32> to vector<2x8x8xf32>
    %49 = arith.subf %43, %48 : vector<2x8x8xf32>
    %50 = math.exp %49 : vector<2x8x8xf32>
    %cst_22 = arith.constant dense<0.000000e+00> : vector<2x8xf32>
    %51 = vector.multi_reduction <add>, %50, %cst_22 [2] : vector<2x8x8xf32> to vector<2x8xf32>
    %52 = vector.shape_cast %51 : vector<2x8xf32> to vector<2x8x1xf32>
    %53 = vector.broadcast %52 : vector<2x8x1xf32> to vector<2x8x8xf32>
    %54 = arith.divf %50, %53 : vector<2x8x8xf32>
    "tpu.trace_start"() <{level = 10 : i32, message = "bqk,bkd->bqd"}> : () -> ()
    %cst_23 = arith.constant dense<0.000000e+00> : vector<2x8x16xf32>
    %55 = tpu.matmul %54, %38, %cst_23 {dimension_numbers = #tpu.dot_dimension_numbers<[2], [1], [1], [2], [0, 0, 0, 1, 1, 2], [0], [0]>} : vector<2x8x8xf32>, vector<2x8x16xf32>, vector<2x8x16xf32> -> vector<2x8x16xf32>
    "tpu.trace_stop"() : () -> ()
    %c0_24 = arith.constant 0 : index
    %c32 = arith.constant 32 : index
    %c0_25 = arith.constant 0 : index
    %56 = vector.load %arg3[%c0_24, %c32, %c0_25] : memref<2x160x96xf32, #tpu.memory_space<vmem>>, vector<1x16x32xf32>
    %57 = vector.shape_cast %56 : vector<1x16x32xf32> to vector<16x32xf32>
    %58 = vector.shape_cast %55 : vector<2x8x16xf32> to vector<16x16xf32>
    %cst_26 = arith.constant dense<0.000000e+00> : vector<16x32xf32>
    %59 = tpu.matmul %58, %57, %cst_26 {dimension_numbers = #tpu.dot_dimension_numbers<[1], [0], [0], [1], [0, 0, 1, 1], [], []>} : vector<16x16xf32>, vector<16x32xf32>, vector<16x32xf32> -> vector<16x32xf32>
    %c0_27 = arith.constant 0 : index
    %c1_28 = arith.constant 1 : index
    %c0_29 = arith.constant 0 : index
    %60 = vector.load %arg4[%c0_27, %c1_28, %c0_29] : memref<2x8x128xf32, #tpu.memory_space<vmem>>, vector<1x1x32xf32>
    %61 = vector.shape_cast %60 : vector<1x1x32xf32> to vector<1x32xf32>
    %62 = vector.broadcast %61 : vector<1x32xf32> to vector<16x32xf32>
    %63 = arith.addf %59, %62 : vector<16x32xf32>
    %64 = vector.extract_strided_slice %32 {offsets = [0, 16], sizes = [16, 16], strides = [1, 1]} : vector<16x96xf32> to vector<16x16xf32>
    %65 = vector.shape_cast %64 : vector<16x16xf32> to vector<2x8x16xf32>
    %66 = vector.extract_strided_slice %32 {offsets = [0, 48], sizes = [16, 16], strides = [1, 1]} : vector<16x96xf32> to vector<16x16xf32>
    %67 = vector.shape_cast %66 : vector<16x16xf32> to vector<2x8x16xf32>
    %68 = vector.extract_strided_slice %32 {offsets = [0, 80], sizes = [16, 16], strides = [1, 1]} : vector<16x96xf32> to vector<16x16xf32>
    %69 = vector.shape_cast %68 : vector<16x16xf32> to vector<2x8x16xf32>
    "tpu.trace_start"() <{level = 10 : i32, message = "bqd,bkd->bqk"}> : () -> ()
    %cst_30 = arith.constant dense<0.000000e+00> : vector<2x8x8xf32>
    %70 = tpu.matmul %65, %67, %cst_30 {dimension_numbers = #tpu.dot_dimension_numbers<[2], [2], [1], [1], [0, 0, 0, 1, 1, 1], [0], [0]>} : vector<2x8x16xf32>, vector<2x8x16xf32>, vector<2x8x8xf32> -> vector<2x8x8xf32>
    "tpu.trace_stop"() : () -> ()
    %cst_31 = arith.constant 2.500000e-01 : f32
    %71 = vector.broadcast %cst_31 : f32 to vector<2x8x8xf32>
    %72 = arith.mulf %70, %71 : vector<2x8x8xf32>
    %73 = vector.broadcast %0 : vector<2x1x8xf32> to vector<2x8x8xf32>
    %74 = arith.addf %72, %73 : vector<2x8x8xf32>
    %cst_32 = arith.constant dense<0xFF800000> : vector<2x8xf32>
    %75 = vector.multi_reduction <maximumf>, %74, %cst_32 [2] : vector<2x8x8xf32> to vector<2x8xf32>
    %cst_33 = arith.constant 0xFF800000 : f32
    %76 = vector.broadcast %cst_33 : f32 to vector<2x8xf32>
    %77 = arith.maximumf %76, %75 : vector<2x8xf32>
    %78 = vector.shape_cast %77 : vector<2x8xf32> to vector<2x8x1xf32>
    %79 = vector.broadcast %78 : vector<2x8x1xf32> to vector<2x8x8xf32>
    %80 = arith.subf %74, %79 : vector<2x8x8xf32>
    %81 = math.exp %80 : vector<2x8x8xf32>
    %cst_34 = arith.constant dense<0.000000e+00> : vector<2x8xf32>
    %82 = vector.multi_reduction <add>, %81, %cst_34 [2] : vector<2x8x8xf32> to vector<2x8xf32>
    %83 = vector.shape_cast %82 : vector<2x8xf32> to vector<2x8x1xf32>
    %84 = vector.broadcast %83 : vector<2x8x1xf32> to vector<2x8x8xf32>
    %85 = arith.divf %81, %84 : vector<2x8x8xf32>
    "tpu.trace_start"() <{level = 10 : i32, message = "bqk,bkd->bqd"}> : () -> ()
    %cst_35 = arith.constant dense<0.000000e+00> : vector<2x8x16xf32>
    %86 = tpu.matmul %85, %69, %cst_35 {dimension_numbers = #tpu.dot_dimension_numbers<[2], [1], [1], [2], [0, 0, 0, 1, 1, 2], [0], [0]>} : vector<2x8x8xf32>, vector<2x8x16xf32>, vector<2x8x16xf32> -> vector<2x8x16xf32>
    "tpu.trace_stop"() : () -> ()
    %c0_36 = arith.constant 0 : index
    %c48 = arith.constant 48 : index
    %c0_37 = arith.constant 0 : index
    %87 = vector.load %arg3[%c0_36, %c48, %c0_37] : memref<2x160x96xf32, #tpu.memory_space<vmem>>, vector<1x16x32xf32>
    %88 = vector.shape_cast %87 : vector<1x16x32xf32> to vector<16x32xf32>
    %89 = vector.shape_cast %86 : vector<2x8x16xf32> to vector<16x16xf32>
    %cst_38 = arith.constant dense<0.000000e+00> : vector<16x32xf32>
    %90 = tpu.matmul %89, %88, %cst_38 {dimension_numbers = #tpu.dot_dimension_numbers<[1], [0], [0], [1], [0, 0, 1, 1], [], []>} : vector<16x16xf32>, vector<16x32xf32>, vector<16x32xf32> -> vector<16x32xf32>
    %91 = arith.addf %63, %90 : vector<16x32xf32>
    %92 = arith.addf %91, %25 : vector<16x32xf32>
    %c0_39 = arith.constant 0 : index
    %c4 = arith.constant 4 : index
    %c0_40 = arith.constant 0 : index
    %93 = vector.load %arg4[%c0_39, %c4, %c0_40] : memref<2x8x128xf32, #tpu.memory_space<vmem>>, vector<1x1x32xf32>
    %94 = vector.shape_cast %93 : vector<1x1x32xf32> to vector<1x32xf32>
    %c0_41 = arith.constant 0 : index
    %c5 = arith.constant 5 : index
    %c0_42 = arith.constant 0 : index
    %95 = vector.load %arg4[%c0_41, %c5, %c0_42] : memref<2x8x128xf32, #tpu.memory_space<vmem>>, vector<1x1x32xf32>
    %96 = vector.shape_cast %95 : vector<1x1x32xf32> to vector<1x32xf32>
    %cst_43 = arith.constant dense<0.000000e+00> : vector<16xf32>
    %97 = vector.multi_reduction <add>, %92, %cst_43 [1] : vector<16x32xf32> to vector<16xf32>
    %98 = vector.shape_cast %97 : vector<16xf32> to vector<16x1xf32>
    %cst_44 = arith.constant 3.200000e+01 : f32
    %99 = vector.broadcast %cst_44 : f32 to vector<16x1xf32>
    %100 = arith.divf %98, %99 : vector<16x1xf32>
    %101 = vector.broadcast %100 : vector<16x1xf32> to vector<16x32xf32>
    %102 = arith.subf %92, %101 : vector<16x32xf32>
    %103 = arith.mulf %102, %102 : vector<16x32xf32>
    %cst_45 = arith.constant dense<0.000000e+00> : vector<16xf32>
    %104 = vector.multi_reduction <add>, %103, %cst_45 [1] : vector<16x32xf32> to vector<16xf32>
    %105 = vector.shape_cast %104 : vector<16xf32> to vector<16x1xf32>
    %cst_46 = arith.constant 3.200000e+01 : f32
    %106 = vector.broadcast %cst_46 : f32 to vector<16x1xf32>
    %107 = arith.divf %105, %106 : vector<16x1xf32>
    %108 = vector.broadcast %100 : vector<16x1xf32> to vector<16x32xf32>
    %109 = arith.subf %92, %108 : vector<16x32xf32>
    %cst_47 = arith.constant 9.99999996E-13 : f32
    %110 = vector.broadcast %cst_47 : f32 to vector<16x1xf32>
    %111 = arith.addf %107, %110 : vector<16x1xf32>
    %112 = math.rsqrt %111 : vector<16x1xf32>
    %113 = vector.broadcast %112 : vector<16x1xf32> to vector<16x32xf32>
    %114 = arith.mulf %109, %113 : vector<16x32xf32>
    %115 = vector.broadcast %94 : vector<1x32xf32> to vector<16x32xf32>
    %116 = arith.mulf %114, %115 : vector<16x32xf32>
    %117 = vector.broadcast %96 : vector<1x32xf32> to vector<16x32xf32>
    %118 = arith.addf %116, %117 : vector<16x32xf32>
    %c0_48 = arith.constant 0 : index
    %c64 = arith.constant 64 : index
    %c0_49 = arith.constant 0 : index
    %119 = vector.load %arg3[%c0_48, %c64, %c0_49] : memref<2x160x96xf32, #tpu.memory_space<vmem>>, vector<1x32x64xf32>
    %120 = vector.shape_cast %119 : vector<1x32x64xf32> to vector<32x64xf32>
    %c0_50 = arith.constant 0 : index
    %c96 = arith.constant 96 : index
    %c0_51 = arith.constant 0 : index
    %121 = vector.load %arg3[%c0_50, %c96, %c0_51] : memref<2x160x96xf32, #tpu.memory_space<vmem>>, vector<1x64x32xf32>
    %122 = vector.shape_cast %121 : vector<1x64x32xf32> to vector<64x32xf32>
    %cst_52 = arith.constant dense<0.000000e+00> : vector<16x64xf32>
    %123 = tpu.matmul %118, %120, %cst_52 {dimension_numbers = #tpu.dot_dimension_numbers<[1], [0], [0], [1], [0, 0, 1, 1], [], []>} : vector<16x32xf32>, vector<32x64xf32>, vector<16x64xf32> -> vector<16x64xf32>
    %c0_53 = arith.constant 0 : index
    %c2 = arith.constant 2 : index
    %c0_54 = arith.constant 0 : index
    %124 = vector.load %arg4[%c0_53, %c2, %c0_54] : memref<2x8x128xf32, #tpu.memory_space<vmem>>, vector<1x1x64xf32>
    %125 = vector.shape_cast %124 : vector<1x1x64xf32> to vector<1x64xf32>
    %126 = vector.broadcast %125 : vector<1x64xf32> to vector<16x64xf32>
    %127 = arith.addf %123, %126 : vector<16x64xf32>
    %128 = arith.mulf %127, %127 : vector<16x64xf32>
    %129 = arith.mulf %127, %128 : vector<16x64xf32>
    %cst_55 = arith.constant 4.471500e-02 : f32
    %130 = vector.broadcast %cst_55 : f32 to vector<16x64xf32>
    %131 = arith.mulf %130, %129 : vector<16x64xf32>
    %132 = arith.addf %127, %131 : vector<16x64xf32>
    %cst_56 = arith.constant 0.797884583 : f32
    %133 = vector.broadcast %cst_56 : f32 to vector<16x64xf32>
    %134 = arith.mulf %133, %132 : vector<16x64xf32>
    %135 = math.tanh %134 : vector<16x64xf32>
    %cst_57 = arith.constant 1.000000e+00 : f32
    %136 = vector.broadcast %cst_57 : f32 to vector<16x64xf32>
    %137 = arith.addf %136, %135 : vector<16x64xf32>
    %cst_58 = arith.constant 5.000000e-01 : f32
    %138 = vector.broadcast %cst_58 : f32 to vector<16x64xf32>
    %139 = arith.mulf %138, %137 : vector<16x64xf32>
    %140 = arith.mulf %127, %139 : vector<16x64xf32>
    %cst_59 = arith.constant dense<0.000000e+00> : vector<16x32xf32>
    %141 = tpu.matmul %140, %122, %cst_59 {dimension_numbers = #tpu.dot_dimension_numbers<[1], [0], [0], [1], [0, 0, 1, 1], [], []>} : vector<16x64xf32>, vector<64x32xf32>, vector<16x32xf32> -> vector<16x32xf32>
    %c0_60 = arith.constant 0 : index
    %c3 = arith.constant 3 : index
    %c0_61 = arith.constant 0 : index
    %142 = vector.load %arg4[%c0_60, %c3, %c0_61] : memref<2x8x128xf32, #tpu.memory_space<vmem>>, vector<1x1x32xf32>
    %143 = vector.shape_cast %142 : vector<1x1x32xf32> to vector<1x32xf32>
    %144 = vector.broadcast %143 : vector<1x32xf32> to vector<16x32xf32>
    %145 = arith.addf %141, %144 : vector<16x32xf32>
    %146 = arith.addf %145, %118 : vector<16x32xf32>
    %c0_62 = arith.constant 0 : index
    %c6 = arith.constant 6 : index
    %c0_63 = arith.constant 0 : index
    %147 = vector.load %arg4[%c0_62, %c6, %c0_63] : memref<2x8x128xf32, #tpu.memory_space<vmem>>, vector<1x1x32xf32>
    %148 = vector.shape_cast %147 : vector<1x1x32xf32> to vector<1x32xf32>
    %c0_64 = arith.constant 0 : index
    %c7 = arith.constant 7 : index
    %c0_65 = arith.constant 0 : index
    %149 = vector.load %arg4[%c0_64, %c7, %c0_65] : memref<2x8x128xf32, #tpu.memory_space<vmem>>, vector<1x1x32xf32>
    %150 = vector.shape_cast %149 : vector<1x1x32xf32> to vector<1x32xf32>
    %cst_66 = arith.constant dense<0.000000e+00> : vector<16xf32>
    %151 = vector.multi_reduction <add>, %146, %cst_66 [1] : vector<16x32xf32> to vector<16xf32>
    %152 = vector.shape_cast %151 : vector<16xf32> to vector<16x1xf32>
    %cst_67 = arith.constant 3.200000e+01 : f32
    %153 = vector.broadcast %cst_67 : f32 to vector<16x1xf32>
    %154 = arith.divf %152, %153 : vector<16x1xf32>
    %155 = vector.broadcast %154 : vector<16x1xf32> to vector<16x32xf32>
    %156 = arith.subf %146, %155 : vector<16x32xf32>
    %157 = arith.mulf %156, %156 : vector<16x32xf32>
    %cst_68 = arith.constant dense<0.000000e+00> : vector<16xf32>
    %158 = vector.multi_reduction <add>, %157, %cst_68 [1] : vector<16x32xf32> to vector<16xf32>
    %159 = vector.shape_cast %158 : vector<16xf32> to vector<16x1xf32>
    %cst_69 = arith.constant 3.200000e+01 : f32
    %160 = vector.broadcast %cst_69 : f32 to vector<16x1xf32>
    %161 = arith.divf %159, %160 : vector<16x1xf32>
    %162 = vector.broadcast %154 : vector<16x1xf32> to vector<16x32xf32>
    %163 = arith.subf %146, %162 : vector<16x32xf32>
    %cst_70 = arith.constant 9.99999996E-13 : f32
    %164 = vector.broadcast %cst_70 : f32 to vector<16x1xf32>
    %165 = arith.addf %161, %164 : vector<16x1xf32>
    %166 = math.rsqrt %165 : vector<16x1xf32>
    %167 = vector.broadcast %166 : vector<16x1xf32> to vector<16x32xf32>
    %168 = arith.mulf %163, %167 : vector<16x32xf32>
    %169 = vector.broadcast %148 : vector<1x32xf32> to vector<16x32xf32>
    %170 = arith.mulf %168, %169 : vector<16x32xf32>
    %171 = vector.broadcast %150 : vector<1x32xf32> to vector<16x32xf32>
    %172 = arith.addf %170, %171 : vector<16x32xf32>
    %c1_71 = arith.constant 1 : index
    %c0_72 = arith.constant 0 : index
    %c0_73 = arith.constant 0 : index
    %173 = vector.load %arg3[%c1_71, %c0_72, %c0_73] : memref<2x160x96xf32, #tpu.memory_space<vmem>>, vector<1x32x96xf32>
    %174 = vector.shape_cast %173 : vector<1x32x96xf32> to vector<32x96xf32>
    %c1_74 = arith.constant 1 : index
    %c0_75 = arith.constant 0 : index
    %c0_76 = arith.constant 0 : index
    %175 = vector.load %arg4[%c1_74, %c0_75, %c0_76] : memref<2x8x128xf32, #tpu.memory_space<vmem>>, vector<1x1x96xf32>
    %176 = vector.shape_cast %175 : vector<1x1x96xf32> to vector<1x96xf32>
    %cst_77 = arith.constant dense<0.000000e+00> : vector<16x96xf32>
    %177 = tpu.matmul %172, %174, %cst_77 {dimension_numbers = #tpu.dot_dimension_numbers<[1], [0], [0], [1], [0, 0, 1, 1], [], []>} : vector<16x32xf32>, vector<32x96xf32>, vector<16x96xf32> -> vector<16x96xf32>
    %178 = vector.broadcast %176 : vector<1x96xf32> to vector<16x96xf32>
    %179 = arith.addf %177, %178 : vector<16x96xf32>
    %180 = vector.extract_strided_slice %179 {offsets = [0, 0], sizes = [16, 16], strides = [1, 1]} : vector<16x96xf32> to vector<16x16xf32>
    %181 = vector.shape_cast %180 : vector<16x16xf32> to vector<2x8x16xf32>
    %182 = vector.extract_strided_slice %179 {offsets = [0, 32], sizes = [16, 16], strides = [1, 1]} : vector<16x96xf32> to vector<16x16xf32>
    %183 = vector.shape_cast %182 : vector<16x16xf32> to vector<2x8x16xf32>
    %184 = vector.extract_strided_slice %179 {offsets = [0, 64], sizes = [16, 16], strides = [1, 1]} : vector<16x96xf32> to vector<16x16xf32>
    %185 = vector.shape_cast %184 : vector<16x16xf32> to vector<2x8x16xf32>
    "tpu.trace_start"() <{level = 10 : i32, message = "bqd,bkd->bqk"}> : () -> ()
    %cst_78 = arith.constant dense<0.000000e+00> : vector<2x8x8xf32>
    %186 = tpu.matmul %181, %183, %cst_78 {dimension_numbers = #tpu.dot_dimension_numbers<[2], [2], [1], [1], [0, 0, 0, 1, 1, 1], [0], [0]>} : vector<2x8x16xf32>, vector<2x8x16xf32>, vector<2x8x8xf32> -> vector<2x8x8xf32>
    "tpu.trace_stop"() : () -> ()
    %cst_79 = arith.constant 2.500000e-01 : f32
    %187 = vector.broadcast %cst_79 : f32 to vector<2x8x8xf32>
    %188 = arith.mulf %186, %187 : vector<2x8x8xf32>
    %189 = vector.broadcast %0 : vector<2x1x8xf32> to vector<2x8x8xf32>
    %190 = arith.addf %188, %189 : vector<2x8x8xf32>
    %cst_80 = arith.constant dense<0xFF800000> : vector<2x8xf32>
    %191 = vector.multi_reduction <maximumf>, %190, %cst_80 [2] : vector<2x8x8xf32> to vector<2x8xf32>
    %cst_81 = arith.constant 0xFF800000 : f32
    %192 = vector.broadcast %cst_81 : f32 to vector<2x8xf32>
    %193 = arith.maximumf %192, %191 : vector<2x8xf32>
    %194 = vector.shape_cast %193 : vector<2x8xf32> to vector<2x8x1xf32>
    %195 = vector.broadcast %194 : vector<2x8x1xf32> to vector<2x8x8xf32>
    %196 = arith.subf %190, %195 : vector<2x8x8xf32>
    %197 = math.exp %196 : vector<2x8x8xf32>
    %cst_82 = arith.constant dense<0.000000e+00> : vector<2x8xf32>
    %198 = vector.multi_reduction <add>, %197, %cst_82 [2] : vector<2x8x8xf32> to vector<2x8xf32>
    %199 = vector.shape_cast %198 : vector<2x8xf32> to vector<2x8x1xf32>
    %200 = vector.broadcast %199 : vector<2x8x1xf32> to vector<2x8x8xf32>
    %201 = arith.divf %197, %200 : vector<2x8x8xf32>
    "tpu.trace_start"() <{level = 10 : i32, message = "bqk,bkd->bqd"}> : () -> ()
    %cst_83 = arith.constant dense<0.000000e+00> : vector<2x8x16xf32>
    %202 = tpu.matmul %201, %185, %cst_83 {dimension_numbers = #tpu.dot_dimension_numbers<[2], [1], [1], [2], [0, 0, 0, 1, 1, 2], [0], [0]>} : vector<2x8x8xf32>, vector<2x8x16xf32>, vector<2x8x16xf32> -> vector<2x8x16xf32>
    "tpu.trace_stop"() : () -> ()
    %c1_84 = arith.constant 1 : index
    %c32_85 = arith.constant 32 : index
    %c0_86 = arith.constant 0 : index
    %203 = vector.load %arg3[%c1_84, %c32_85, %c0_86] : memref<2x160x96xf32, #tpu.memory_space<vmem>>, vector<1x16x32xf32>
    %204 = vector.shape_cast %203 : vector<1x16x32xf32> to vector<16x32xf32>
    %205 = vector.shape_cast %202 : vector<2x8x16xf32> to vector<16x16xf32>
    %cst_87 = arith.constant dense<0.000000e+00> : vector<16x32xf32>
    %206 = tpu.matmul %205, %204, %cst_87 {dimension_numbers = #tpu.dot_dimension_numbers<[1], [0], [0], [1], [0, 0, 1, 1], [], []>} : vector<16x16xf32>, vector<16x32xf32>, vector<16x32xf32> -> vector<16x32xf32>
    %c1_88 = arith.constant 1 : index
    %c1_89 = arith.constant 1 : index
    %c0_90 = arith.constant 0 : index
    %207 = vector.load %arg4[%c1_88, %c1_89, %c0_90] : memref<2x8x128xf32, #tpu.memory_space<vmem>>, vector<1x1x32xf32>
    %208 = vector.shape_cast %207 : vector<1x1x32xf32> to vector<1x32xf32>
    %209 = vector.broadcast %208 : vector<1x32xf32> to vector<16x32xf32>
    %210 = arith.addf %206, %209 : vector<16x32xf32>
    %211 = vector.extract_strided_slice %179 {offsets = [0, 16], sizes = [16, 16], strides = [1, 1]} : vector<16x96xf32> to vector<16x16xf32>
    %212 = vector.shape_cast %211 : vector<16x16xf32> to vector<2x8x16xf32>
    %213 = vector.extract_strided_slice %179 {offsets = [0, 48], sizes = [16, 16], strides = [1, 1]} : vector<16x96xf32> to vector<16x16xf32>
    %214 = vector.shape_cast %213 : vector<16x16xf32> to vector<2x8x16xf32>
    %215 = vector.extract_strided_slice %179 {offsets = [0, 80], sizes = [16, 16], strides = [1, 1]} : vector<16x96xf32> to vector<16x16xf32>
    %216 = vector.shape_cast %215 : vector<16x16xf32> to vector<2x8x16xf32>
    "tpu.trace_start"() <{level = 10 : i32, message = "bqd,bkd->bqk"}> : () -> ()
    %cst_91 = arith.constant dense<0.000000e+00> : vector<2x8x8xf32>
    %217 = tpu.matmul %212, %214, %cst_91 {dimension_numbers = #tpu.dot_dimension_numbers<[2], [2], [1], [1], [0, 0, 0, 1, 1, 1], [0], [0]>} : vector<2x8x16xf32>, vector<2x8x16xf32>, vector<2x8x8xf32> -> vector<2x8x8xf32>
    "tpu.trace_stop"() : () -> ()
    %cst_92 = arith.constant 2.500000e-01 : f32
    %218 = vector.broadcast %cst_92 : f32 to vector<2x8x8xf32>
    %219 = arith.mulf %217, %218 : vector<2x8x8xf32>
    %220 = vector.broadcast %0 : vector<2x1x8xf32> to vector<2x8x8xf32>
    %221 = arith.addf %219, %220 : vector<2x8x8xf32>
    %cst_93 = arith.constant dense<0xFF800000> : vector<2x8xf32>
    %222 = vector.multi_reduction <maximumf>, %221, %cst_93 [2] : vector<2x8x8xf32> to vector<2x8xf32>
    %cst_94 = arith.constant 0xFF800000 : f32
    %223 = vector.broadcast %cst_94 : f32 to vector<2x8xf32>
    %224 = arith.maximumf %223, %222 : vector<2x8xf32>
    %225 = vector.shape_cast %224 : vector<2x8xf32> to vector<2x8x1xf32>
    %226 = vector.broadcast %225 : vector<2x8x1xf32> to vector<2x8x8xf32>
    %227 = arith.subf %221, %226 : vector<2x8x8xf32>
    %228 = math.exp %227 : vector<2x8x8xf32>
    %cst_95 = arith.constant dense<0.000000e+00> : vector<2x8xf32>
    %229 = vector.multi_reduction <add>, %228, %cst_95 [2] : vector<2x8x8xf32> to vector<2x8xf32>
    %230 = vector.shape_cast %229 : vector<2x8xf32> to vector<2x8x1xf32>
    %231 = vector.broadcast %230 : vector<2x8x1xf32> to vector<2x8x8xf32>
    %232 = arith.divf %228, %231 : vector<2x8x8xf32>
    "tpu.trace_start"() <{level = 10 : i32, message = "bqk,bkd->bqd"}> : () -> ()
    %cst_96 = arith.constant dense<0.000000e+00> : vector<2x8x16xf32>
    %233 = tpu.matmul %232, %216, %cst_96 {dimension_numbers = #tpu.dot_dimension_numbers<[2], [1], [1], [2], [0, 0, 0, 1, 1, 2], [0], [0]>} : vector<2x8x8xf32>, vector<2x8x16xf32>, vector<2x8x16xf32> -> vector<2x8x16xf32>
    "tpu.trace_stop"() : () -> ()
    %c1_97 = arith.constant 1 : index
    %c48_98 = arith.constant 48 : index
    %c0_99 = arith.constant 0 : index
    %234 = vector.load %arg3[%c1_97, %c48_98, %c0_99] : memref<2x160x96xf32, #tpu.memory_space<vmem>>, vector<1x16x32xf32>
    %235 = vector.shape_cast %234 : vector<1x16x32xf32> to vector<16x32xf32>
    %236 = vector.shape_cast %233 : vector<2x8x16xf32> to vector<16x16xf32>
    %cst_100 = arith.constant dense<0.000000e+00> : vector<16x32xf32>
    %237 = tpu.matmul %236, %235, %cst_100 {dimension_numbers = #tpu.dot_dimension_numbers<[1], [0], [0], [1], [0, 0, 1, 1], [], []>} : vector<16x16xf32>, vector<16x32xf32>, vector<16x32xf32> -> vector<16x32xf32>
    %238 = arith.addf %210, %237 : vector<16x32xf32>
    %239 = arith.addf %238, %172 : vector<16x32xf32>
    %c1_101 = arith.constant 1 : index
    %c4_102 = arith.constant 4 : index
    %c0_103 = arith.constant 0 : index
    %240 = vector.load %arg4[%c1_101, %c4_102, %c0_103] : memref<2x8x128xf32, #tpu.memory_space<vmem>>, vector<1x1x32xf32>
    %241 = vector.shape_cast %240 : vector<1x1x32xf32> to vector<1x32xf32>
    %c1_104 = arith.constant 1 : index
    %c5_105 = arith.constant 5 : index
    %c0_106 = arith.constant 0 : index
    %242 = vector.load %arg4[%c1_104, %c5_105, %c0_106] : memref<2x8x128xf32, #tpu.memory_space<vmem>>, vector<1x1x32xf32>
    %243 = vector.shape_cast %242 : vector<1x1x32xf32> to vector<1x32xf32>
    %cst_107 = arith.constant dense<0.000000e+00> : vector<16xf32>
    %244 = vector.multi_reduction <add>, %239, %cst_107 [1] : vector<16x32xf32> to vector<16xf32>
    %245 = vector.shape_cast %244 : vector<16xf32> to vector<16x1xf32>
    %cst_108 = arith.constant 3.200000e+01 : f32
    %246 = vector.broadcast %cst_108 : f32 to vector<16x1xf32>
    %247 = arith.divf %245, %246 : vector<16x1xf32>
    %248 = vector.broadcast %247 : vector<16x1xf32> to vector<16x32xf32>
    %249 = arith.subf %239, %248 : vector<16x32xf32>
    %250 = arith.mulf %249, %249 : vector<16x32xf32>
    %cst_109 = arith.constant dense<0.000000e+00> : vector<16xf32>
    %251 = vector.multi_reduction <add>, %250, %cst_109 [1] : vector<16x32xf32> to vector<16xf32>
    %252 = vector.shape_cast %251 : vector<16xf32> to vector<16x1xf32>
    %cst_110 = arith.constant 3.200000e+01 : f32
    %253 = vector.broadcast %cst_110 : f32 to vector<16x1xf32>
    %254 = arith.divf %252, %253 : vector<16x1xf32>
    %255 = vector.broadcast %247 : vector<16x1xf32> to vector<16x32xf32>
    %256 = arith.subf %239, %255 : vector<16x32xf32>
    %cst_111 = arith.constant 9.99999996E-13 : f32
    %257 = vector.broadcast %cst_111 : f32 to vector<16x1xf32>
    %258 = arith.addf %254, %257 : vector<16x1xf32>
    %259 = math.rsqrt %258 : vector<16x1xf32>
    %260 = vector.broadcast %259 : vector<16x1xf32> to vector<16x32xf32>
    %261 = arith.mulf %256, %260 : vector<16x32xf32>
    %262 = vector.broadcast %241 : vector<1x32xf32> to vector<16x32xf32>
    %263 = arith.mulf %261, %262 : vector<16x32xf32>
    %264 = vector.broadcast %243 : vector<1x32xf32> to vector<16x32xf32>
    %265 = arith.addf %263, %264 : vector<16x32xf32>
    %c1_112 = arith.constant 1 : index
    %c64_113 = arith.constant 64 : index
    %c0_114 = arith.constant 0 : index
    %266 = vector.load %arg3[%c1_112, %c64_113, %c0_114] : memref<2x160x96xf32, #tpu.memory_space<vmem>>, vector<1x32x64xf32>
    %267 = vector.shape_cast %266 : vector<1x32x64xf32> to vector<32x64xf32>
    %c1_115 = arith.constant 1 : index
    %c96_116 = arith.constant 96 : index
    %c0_117 = arith.constant 0 : index
    %268 = vector.load %arg3[%c1_115, %c96_116, %c0_117] : memref<2x160x96xf32, #tpu.memory_space<vmem>>, vector<1x64x32xf32>
    %269 = vector.shape_cast %268 : vector<1x64x32xf32> to vector<64x32xf32>
    %cst_118 = arith.constant dense<0.000000e+00> : vector<16x64xf32>
    %270 = tpu.matmul %265, %267, %cst_118 {dimension_numbers = #tpu.dot_dimension_numbers<[1], [0], [0], [1], [0, 0, 1, 1], [], []>} : vector<16x32xf32>, vector<32x64xf32>, vector<16x64xf32> -> vector<16x64xf32>
    %c1_119 = arith.constant 1 : index
    %c2_120 = arith.constant 2 : index
    %c0_121 = arith.constant 0 : index
    %271 = vector.load %arg4[%c1_119, %c2_120, %c0_121] : memref<2x8x128xf32, #tpu.memory_space<vmem>>, vector<1x1x64xf32>
    %272 = vector.shape_cast %271 : vector<1x1x64xf32> to vector<1x64xf32>
    %273 = vector.broadcast %272 : vector<1x64xf32> to vector<16x64xf32>
    %274 = arith.addf %270, %273 : vector<16x64xf32>
    %275 = arith.mulf %274, %274 : vector<16x64xf32>
    %276 = arith.mulf %274, %275 : vector<16x64xf32>
    %cst_122 = arith.constant 4.471500e-02 : f32
    %277 = vector.broadcast %cst_122 : f32 to vector<16x64xf32>
    %278 = arith.mulf %277, %276 : vector<16x64xf32>
    %279 = arith.addf %274, %278 : vector<16x64xf32>
    %cst_123 = arith.constant 0.797884583 : f32
    %280 = vector.broadcast %cst_123 : f32 to vector<16x64xf32>
    %281 = arith.mulf %280, %279 : vector<16x64xf32>
    %282 = math.tanh %281 : vector<16x64xf32>
    %cst_124 = arith.constant 1.000000e+00 : f32
    %283 = vector.broadcast %cst_124 : f32 to vector<16x64xf32>
    %284 = arith.addf %283, %282 : vector<16x64xf32>
    %cst_125 = arith.constant 5.000000e-01 : f32
    %285 = vector.broadcast %cst_125 : f32 to vector<16x64xf32>
    %286 = arith.mulf %285, %284 : vector<16x64xf32>
    %287 = arith.mulf %274, %286 : vector<16x64xf32>
    %cst_126 = arith.constant dense<0.000000e+00> : vector<16x32xf32>
    %288 = tpu.matmul %287, %269, %cst_126 {dimension_numbers = #tpu.dot_dimension_numbers<[1], [0], [0], [1], [0, 0, 1, 1], [], []>} : vector<16x64xf32>, vector<64x32xf32>, vector<16x32xf32> -> vector<16x32xf32>
    %c1_127 = arith.constant 1 : index
    %c3_128 = arith.constant 3 : index
    %c0_129 = arith.constant 0 : index
    %289 = vector.load %arg4[%c1_127, %c3_128, %c0_129] : memref<2x8x128xf32, #tpu.memory_space<vmem>>, vector<1x1x32xf32>
    %290 = vector.shape_cast %289 : vector<1x1x32xf32> to vector<1x32xf32>
    %291 = vector.broadcast %290 : vector<1x32xf32> to vector<16x32xf32>
    %292 = arith.addf %288, %291 : vector<16x32xf32>
    %293 = arith.addf %292, %265 : vector<16x32xf32>
    %c1_130 = arith.constant 1 : index
    %c6_131 = arith.constant 6 : index
    %c0_132 = arith.constant 0 : index
    %294 = vector.load %arg4[%c1_130, %c6_131, %c0_132] : memref<2x8x128xf32, #tpu.memory_space<vmem>>, vector<1x1x32xf32>
    %295 = vector.shape_cast %294 : vector<1x1x32xf32> to vector<1x32xf32>
    %c1_133 = arith.constant 1 : index
    %c7_134 = arith.constant 7 : index
    %c0_135 = arith.constant 0 : index
    %296 = vector.load %arg4[%c1_133, %c7_134, %c0_135] : memref<2x8x128xf32, #tpu.memory_space<vmem>>, vector<1x1x32xf32>
    %297 = vector.shape_cast %296 : vector<1x1x32xf32> to vector<1x32xf32>
    %cst_136 = arith.constant dense<0.000000e+00> : vector<16xf32>
    %298 = vector.multi_reduction <add>, %293, %cst_136 [1] : vector<16x32xf32> to vector<16xf32>
    %299 = vector.shape_cast %298 : vector<16xf32> to vector<16x1xf32>
    %cst_137 = arith.constant 3.200000e+01 : f32
    %300 = vector.broadcast %cst_137 : f32 to vector<16x1xf32>
    %301 = arith.divf %299, %300 : vector<16x1xf32>
    %302 = vector.broadcast %301 : vector<16x1xf32> to vector<16x32xf32>
    %303 = arith.subf %293, %302 : vector<16x32xf32>
    %304 = arith.mulf %303, %303 : vector<16x32xf32>
    %cst_138 = arith.constant dense<0.000000e+00> : vector<16xf32>
    %305 = vector.multi_reduction <add>, %304, %cst_138 [1] : vector<16x32xf32> to vector<16xf32>
    %306 = vector.shape_cast %305 : vector<16xf32> to vector<16x1xf32>
    %cst_139 = arith.constant 3.200000e+01 : f32
    %307 = vector.broadcast %cst_139 : f32 to vector<16x1xf32>
    %308 = arith.divf %306, %307 : vector<16x1xf32>
    %309 = vector.broadcast %301 : vector<16x1xf32> to vector<16x32xf32>
    %310 = arith.subf %293, %309 : vector<16x32xf32>
    %cst_140 = arith.constant 9.99999996E-13 : f32
    %311 = vector.broadcast %cst_140 : f32 to vector<16x1xf32>
    %312 = arith.addf %308, %311 : vector<16x1xf32>
    %313 = math.rsqrt %312 : vector<16x1xf32>
    %314 = vector.broadcast %313 : vector<16x1xf32> to vector<16x32xf32>
    %315 = arith.mulf %310, %314 : vector<16x32xf32>
    %316 = vector.broadcast %295 : vector<1x32xf32> to vector<16x32xf32>
    %317 = arith.mulf %315, %316 : vector<16x32xf32>
    %318 = vector.broadcast %297 : vector<1x32xf32> to vector<16x32xf32>
    %319 = arith.addf %317, %318 : vector<16x32xf32>
    %320 = vector.shape_cast %319 : vector<16x32xf32> to vector<2x8x32xf32>
    %cst_141 = arith.constant dense<0.000000e+00> : vector<2x32xf32>
    %321 = vector.multi_reduction <add>, %320, %cst_141 [1] : vector<2x8x32xf32> to vector<2x32xf32>
    %cst_142 = arith.constant 8.000000e+00 : f32
    %322 = vector.broadcast %cst_142 : f32 to vector<2x32xf32>
    %323 = arith.divf %321, %322 : vector<2x32xf32>
    %cst_143 = arith.constant dense<0xFF800000> : vector<2x32xf32>
    %324 = vector.multi_reduction <maximumf>, %320, %cst_143 [1] : vector<2x8x32xf32> to vector<2x32xf32>
    %c2_144 = arith.constant 2 : index
    %c0_145 = arith.constant 0 : index
    %325 = vector.load %arg5[%c2_144, %c0_145] : memref<8x128xf32, #tpu.memory_space<vmem>>, vector<1x32xf32>
    %326 = vector.broadcast %325 : vector<1x32xf32> to vector<2x32xf32>
    %327 = arith.mulf %323, %326 : vector<2x32xf32>
    %cst_146 = arith.constant dense<0.000000e+00> : vector<2xf32>
    %328 = vector.multi_reduction <add>, %327, %cst_146 [1] : vector<2x32xf32> to vector<2xf32>
    %329 = vector.shape_cast %328 : vector<2xf32> to vector<2x1xf32>
    %c3_147 = arith.constant 3 : index
    %c0_148 = arith.constant 0 : index
    %330 = vector.load %arg5[%c3_147, %c0_148] : memref<8x128xf32, #tpu.memory_space<vmem>>, vector<1x32xf32>
    %331 = vector.broadcast %330 : vector<1x32xf32> to vector<2x32xf32>
    %332 = arith.mulf %324, %331 : vector<2x32xf32>
    %cst_149 = arith.constant dense<0.000000e+00> : vector<2xf32>
    %333 = vector.multi_reduction <add>, %332, %cst_149 [1] : vector<2x32xf32> to vector<2xf32>
    %334 = vector.shape_cast %333 : vector<2xf32> to vector<2x1xf32>
    %335 = arith.addf %329, %334 : vector<2x1xf32>
    %c4_150 = arith.constant 4 : index
    %c0_151 = arith.constant 0 : index
    %336 = vector.load %arg5[%c4_150, %c0_151] : memref<8x128xf32, #tpu.memory_space<vmem>>, vector<1x1xf32>
    %337 = vector.broadcast %336 : vector<1x1xf32> to vector<2x1xf32>
    %338 = arith.addf %335, %337 : vector<2x1xf32>
    %339 = arith.negf %338 : vector<2x1xf32>
    %340 = math.exp %339 : vector<2x1xf32>
    %cst_152 = arith.constant 1.000000e+00 : f32
    %341 = vector.broadcast %cst_152 : f32 to vector<2x1xf32>
    %342 = arith.addf %341, %340 : vector<2x1xf32>
    %343 = arith.divf %341, %342 : vector<2x1xf32>
    %c0_153 = arith.constant 0 : index
    %c0_154 = arith.constant 0 : index
    %344 = vector.load %arg6[%c0_153, %c0_154] : memref<2x1xf32, #tpu.memory_space<vmem>>, vector<2x1xf32>
    tpu.vector_store %arg6[%c0_153, %c0_154], %343 {strides = array<i32>} : memref<2x1xf32, #tpu.memory_space<vmem>>, vector<2x1xf32>,
    return
  }
  func.func @transform_0(%arg0: i32) -> (i32, i32) {
    %c0_i32 = arith.constant 0 : i32
    %c0_i32_0 = arith.constant 0 : i32
    %c0_i32_1 = arith.constant 0 : i32
    return %c0_i32, %c0_i32_0 : i32, i32
  }
  func.func @transform_1(%arg0: i32) -> (i32, i32, i32) {
    %c0_i32 = arith.constant 0 : i32
    %c0_i32_0 = arith.constant 0 : i32
    %c0_i32_1 = arith.constant 0 : i32
    %c0_i32_2 = arith.constant 0 : i32
    return %c0_i32, %c0_i32_0, %c0_i32_1 : i32, i32, i32
  }
  func.func @transform_2(%arg0: i32) -> (i32, i32, i32) {
    %c0_i32 = arith.constant 0 : i32
    %c0_i32_0 = arith.constant 0 : i32
    %c0_i32_1 = arith.constant 0 : i32
    %c0_i32_2 = arith.constant 0 : i32
    return %c0_i32, %c0_i32_0, %c0_i32_1 : i32, i32, i32
  }
  func.func @transform_3(%arg0: i32) -> (i32, i32, i32) {
    %c0_i32 = arith.constant 0 : i32
    %c0_i32_0 = arith.constant 0 : i32
    %c0_i32_1 = arith.constant 0 : i32
    %c0_i32_2 = arith.constant 0 : i32
    return %c0_i32, %c0_i32_0, %c0_i32_1 : i32, i32, i32
  }
  func.func @transform_4(%arg0: i32) -> (i32, i32) {
    %c0_i32 = arith.constant 0 : i32
    %c0_i32_0 = arith.constant 0 : i32
    %c0_i32_1 = arith.constant 0 : i32
    return %c0_i32, %c0_i32_0 : i32, i32
  }
  func.func @transform_5(%arg0: i32) -> (i32, i32) {
    %c0_i32 = arith.constant 0 : i32
    %c0_i32_0 = arith.constant 0 : i32
    %c0_i32_1 = arith.constant 0 : i32
    return %c0_i32, %c0_i32_0 : i32, i32
  }
}

</mosaic_0001>

<bundles_post_ra>
// kernel: recommendation_forward.1
= control target key start
LH: loop header
LB: loop body
LE: loop exit
PB: predicated region body
PF: predicated region fallthrough
CT: control target
= control target key end

     0   :  { %10 = vsyncpa [#allocation3], 0  ;;  %s1622_s21 = smov [#allocation2]   ;;  %s1623_s23 = smov 128   ;;  %s1945_s0 = inlined_call_operand.vmem [shape: f32[16,32], index: 0, kind: input, shape index: {}]   ;;  %s1946_s1 = inlined_call_operand.vmem [shape: f32[2,1,8], index: 1, kind: input, shape index: {}]   ;;  %s1947_s2 = inlined_call_operand.hbm [shape: f32[2,160,96], index: 2, kind: input, shape index: {}]   ;;  %s1948_s3 = inlined_call_operand.vmem [shape: f32[2,8,128], index: 3, kind: input, shape index: {}]   ;;  %s1949_s4 = inlined_call_operand.vmem [shape: f32[8,128], index: 4, kind: input, shape index: {}]   ;;  %s1950_s5 = inlined_call_operand.vmem [shape: f32[2,1], index: 5, kind: output, shape index: {}]  }
   0x1   :  { %s19_s20 = sshll.u32 %s1947_s2, 4  ;;  %s21_s22 = sshll.u32 %s1622_s21, 4  ;;  %s20_s20 = int_to_ptr.hbm [resolvable:$true] %s19_s20  ;;  %s22_s22 = int_to_ptr.vmem [resolvable:$true] %s21_s22 }
   0x2   :  { %s1624_s24 = smov 8  }
   0x3   :  { %27 = dma.hbm_to_vmem [thread:$0]  %s20_s20, 5120, %s22_s22, [#allocation3], %s1623_s23, %s1623_s23, %s1624_s24  }
   0x4   :  { %1620 = dma.done.wait [#allocation3], 5120  }
   0x5   :  { %1621 = vsyncadd [#allocation3], 4294962176  ;;  %vm42_vm0 = vcmask 261120   ;;  %v38_v0 = vld [vmem:[%s1945_s0] sm:$0xff]  ;;  %v39_v1 = vld [vmem:[%s1945_s0 + $0x8] sm:$0xff]  ;;  %v1625_v4 = vmov 32.0  }
   0x6   :  { %v43_v2 = vsel %vm42_vm0, %v38_v0, 0.0  ;;  %v46_v3 = vsel %vm42_vm0, %v39_v1, 0.0  ;;  %1528 = vrcp.f32 %v1625_v4  ;;  %v103_v21 = vld [vmem:[#allocation2 + $0x18] sm:$0xff]  ;;  %v102_v22 = vld [vmem:[#allocation2 + $0x10] sm:$0xff]  ;;  %v101_v23 = vld [vmem:[#allocation2 + $0x8] sm:$0xff]  ;;  %s1626_s8 = smov 80  }
   0x7   :  { %44 = vadd.xlane.f32.xlu0 %v43_v2  ;;  %124 = vmatpush.msra.mxu0 %v103_v21  ;;  %v100_v24 = vld [vmem:[#allocation2] sm:$0xff]  ;;  %s1627_s9 = smov 96   ;;  %s1628_s10 = smov 112   ;;  %vm138_vm8 = vcmask 130048   ;;  %vm200_vm9 = vcmask 64512  }
   0x8   :  { %v1505_v39 = vld [vmem:[%s1949_s4] ss:$0 sm:$0xff]  ;;  %v1506_v43 = vld [vmem:[%s1949_s4 + $0x1] ss:$0 sm:$0xff]  ;;  %s1629_s15 = smov 64  }
   0x9   :  { %125 = vmatpush.msra.mxu0 %v102_v22  ;;  %v1507_v53 = vld [vmem:[%s1948_s3] ss:$0 sm:$0xff] }
   0xa   :  { %v1717_v62 = vld [vmem:[%s1946_s1] ss:$0 sm:$0xff] }
   0xb   :  { %126 = vmatpush.msra.mxu0 %v101_v23 }
   0xc   :  { %v1529_v5 = vpop.eup %1528 }
   0xd   :  { %v50_v6 = vmul.f32 32.0, %v1529_v5  ;;  %vm54_vm1 = vweird.f32 %v1529_v5  ;;  %127 = vmatpush.msra.mxu0 %v100_v24 }
   0xf   :  { %47 = vadd.xlane.f32.xlu0 %v46_v3  ;;  %v51_v7 = vsub.f32 1.0, %v50_v6  ;;  %v1724_v3 = vld [vmem:[%s1946_s1 + $0x1] ss:$0 sm:$0xff]  ;;  %s1630_s1 = smov 48  }
  0x11   :  { %v52_v8 = vmul.f32 %v1529_v5, %v51_v7 }
  0x13   :  { %v53_v9 = vadd.f32 %v1529_v5, %v52_v8 }
  0x15   :  { %v1673_v10 = vsel %vm54_vm1, %v1529_v5, %v53_v9 }
  0x7a   :  { %v45_v11 = vpop.xlane.xlu0 %44 }
  0x7b   :  { %v56_v12 = vmul.f32 %v1673_v10, %v45_v11 }
  0x7d   :  { %v58_v13 = vsub.f32 %v38_v0, %v56_v12 }
  0x7f   :  { %v60_v14 = vmul.f32 %v58_v13, %v58_v13 }
  0x81   :  { %v62_v15 = vsel %vm42_vm0, %v60_v14, 0.0 }
  0x82   :  { %63 = vadd.xlane.f32.xlu1 %v62_v15  ;;  %v48_v16 = vpop.xlane.xlu0 %47 }
  0x83   :  { %v57_v17 = vmul.f32 %v1673_v10, %v48_v16 }
  0x85   :  { %v59_v18 = vsub.f32 %v39_v1, %v57_v17 }
  0x87   :  { %v61_v19 = vmul.f32 %v59_v18, %v59_v18 }
  0x89   :  { %v65_v20 = vsel %vm42_vm0, %v61_v19, 0.0 }
  0x8a   :  { %66 = vadd.xlane.f32.xlu1 %v65_v20 }
  0xf5   :  { %v64_v25 = vpop.xlane.xlu1 %63 }
  0xf6   :  { %v68_v26 = vmul.f32 %v64_v25, %v1673_v10 }
  0xf8   :  { %v70_v27 = vadd.f32 1e-12, %v68_v26 }
  0xfa   :  { %1530 = vrsqrt.f32 %v70_v27  ;;  %vm78_vm3 = vweird.f32 %v70_v27 }
  0xfd   :  { %v67_v28 = vpop.xlane.xlu1 %66 }
  0xfe   :  { %v69_v29 = vmul.f32 %v67_v28, %v1673_v10 }
 0x100   :  { %v1531_v30 = vpop.eup %1530  ;;  %v71_v31 = vadd.f32 1e-12, %v69_v29 }
 0x101   :  { %v73_v32 = vmul.f32 %v1531_v30, %v70_v27  ;;  %vm79_vm2 = vweird.f32 %v1531_v30 }
 0x102   :  { %1532 = vrsqrt.f32 %v71_v31  ;;  %vm80_vm4 = vmor %vm78_vm3, %vm79_vm2  ;;  %vm88_vm5 = vweird.f32 %v71_v31 }
 0x103   :  { %v74_v33 = vmul.f32 %v1531_v30, %v73_v32 }
 0x105   :  { %v75_v34 = vmul.f32 0.5, %v74_v33 }
 0x107   :  { %v76_v35 = vsub.f32 1.5, %v75_v34 }
 0x108   :  { %v1533_v36 = vpop.eup %1532 }
 0x109   :  { %v77_v37 = vmul.f32 %v1531_v30, %v76_v35  ;;  %v83_v38 = vmul.f32 %v1533_v36, %v71_v31  ;;  %vm89_vm6 = vweird.f32 %v1533_v36 }
 0x10a   :  { %vm90_vm7 = vmor %vm88_vm5, %vm89_vm6 }
 0x10b   :  { %v81_v40 = vsel %vm80_vm4, %v1531_v30, %v77_v37  ;;  %v84_v41 = vmul.f32 %v1533_v36, %v83_v38  ;;  %v302_v38 = vld [vmem:[#allocation2 + $0x28] sm:$0xff] }
 0x10c   :  { %v92_v42 = vmul.f32 %v81_v40, %v58_v13  ;;  %325 = vmatpush.msra.mxu1 %v302_v38 }
 0x10d   :  { %v85_v44 = vmul.f32 0.5, %v84_v41 }
 0x10e   :  { %v95_v45 = vmul.f32 %v1505_v39, %v92_v42 }
 0x10f   :  { %v86_v46 = vsub.f32 1.5, %v85_v44 }
 0x110   :  { %v1687_v47 = vadd.f32 %v1506_v43, %v95_v45 }
 0x111   :  { %v87_v48 = vmul.f32 %v1533_v36, %v86_v46 }
 0x112   :  { %1442 = vmatmul.msk.f32.vlgmr.msra.gmra.mxu0 %vm42_vm0, %v1687_v47 }
 0x113   :  { %v91_v49 = vsel %vm90_vm7, %v1533_v36, %v87_v48 }
 0x114   :  { %v93_v50 = vmul.f32 %v91_v49, %v59_v18 }
 0x116   :  { %v96_v51 = vmul.f32 %v1505_v39, %v93_v50 }
 0x118   :  { %v1691_v52 = vadd.f32 %v1506_v43, %v96_v51 }
 0x11a   :  { %1443 = vmatmul.msk.f32.gmra.mxu0 %vm42_vm0, %v1691_v52 }
 0x18f   :  { %v129_v54 = vpop.f32.mrf.mxu0 }
 0x190   :  { %v1698_v55 = vadd.f32 %v1507_v53, %v129_v54 }
 0x192   :  { %336 = vrot.lane.b32.xlu0 %v1698_v55, %s1626_s8  ;;  %136 = vrot.lane.b32.xlu2 %v1698_v55, %s1627_s9 }
 0x193   :  { %334 = vrot.lane.b32.xlu1 %v1698_v55, %s1628_s10 }
 0x197   :  { %v132_v56 = vpop.f32.mrf.mxu0 }
 0x198   :  { %v133_v57 = vadd.f32 %v1507_v53, %v132_v56 }
 0x19a   :  { %164 = vrot.lane.b32.xlu2 %v133_v57, %s1627_s9 }
 0x1ec   :  { %v137_v58 = vpop.permute.xlu2 %136 }
 0x1ed   :  { %1444 = vmatpush.xpose.msk.msra.mxu2 %vm138_vm8, %v137_v58 }
 0x1f0   :  { %1445 = vmatmul.msk.f32.vlgmr.msra.gmra.mxu2 %vm138_vm8, %v1698_v55 }
 0x1f4   :  { %v165_v59 = vpop.permute.xlu2 %164 }
 0x1f5   :  { %1446 = vmatpush.xpose.msk.msrb.mxu2 %vm138_vm8, %v165_v59 }
 0x1f8   :  { %1447 = vmatmul.msk.f32.vlgmr.msrb.gmra.mxu2 %vm138_vm8, %v133_v57 }
 0x204   :  { %v337_v60 = vpop.permute.xlu0 %336 }
 0x205   :  { %1452 = vmatpush.xpose.msk.msra.mxu2 %vm138_vm8, %v337_v60  ;;  %v335_v61 = vpop.permute.xlu1 %334 }
 0x208   :  { %1453 = vmatmul.msk.f32.vlgmr.msra.gmra.mxu2 %vm138_vm8, %v335_v61 }
 0x273   :  { %v160_v63 = vpop.f32.mrf.mxu2 }
 0x274   :  { %v190_v0 = vmul.f32 0.25, %v160_v63 }
 0x276   :  { %v198_v1 = vadd.f32 %v1717_v62, %v190_v0 }
 0x278   :  { %v201_v2 = vsel %vm200_vm9, %v198_v1, -inf }
 0x279   :  { %202 = vmax.xlane.f32.xlu2 %v201_v2 }
 0x27b   :  { %v187_v4 = vpop.f32.mrf.mxu2 }
 0x27c   :  { %v191_v5 = vmul.f32 0.25, %v187_v4 }
 0x27e   :  { %v199_v6 = vadd.f32 %v1724_v3, %v191_v5 }
 0x280   :  { %v204_v7 = vsel %vm200_vm9, %v199_v6, -inf }
 0x281   :  { %205 = vmax.xlane.f32.xlu0 %v204_v7 }
 0x28b   :  { %v359_v8 = vpop.f32.mrf.mxu2 }
 0x28c   :  { %v390_v9 = vmul.f32 0.25, %v359_v8 }
 0x28e   :  { %v392_v11 = vadd.f32 %v1717_v62, %v390_v9 }
 0x290   :  { %v394_v12 = vsel %vm200_vm9, %v392_v11, -inf }
 0x291   :  { %395 = vmax.xlane.f32.xlu1 %v394_v12  ;;  %275 = vrot.lane.b32.xlu2 %v133_v57, %s1629_s15  ;;  %v301_v12 = vld [vmem:[#allocation2 + $0x20] sm:$0xff] }
 0x292   :  { %326 = vmatpush.msra.mxu1 %v301_v12  ;;  %v591_v12 = vld [vmem:[#allocation2 + $0x90] sm:$0xff] }
 0x295   :  { %249 = vrot.lane.b32.xlu0 %v1698_v55, %s1629_s15 }
 0x29d   :  { %362 = vrot.lane.b32.xlu0 %v133_v57, %s1628_s10 }
 0x2aa   :  { %364 = vrot.lane.b32.xlu1 %v133_v57, %s1626_s8 }
 0x2ec   :  { %v203_v13 = vpop.xlane.xlu2 %202 }
 0x2ed   :  { %v207_v14 = vsub.f32 %v198_v1, %v203_v13  ;;  %v495_v13 = vld [vmem:[#allocation2 + $0x38] sm:$0xff] }
 0x2ef   :  { %v209_v15 = vmul.f32 1.442695, %v207_v14  ;;  %v494_v14 = vld [vmem:[#allocation2 + $0x30] sm:$0xff] }
 0x2f1   :  { %1534 = vpow2.f32 %v209_v15 }
 0x2f4   :  { %v206_v16 = vpop.xlane.xlu0 %205  ;;  %v276_v27 = vpop.permute.xlu2 %275 }
 0x2f5   :  { %v208_v17 = vsub.f32 %v199_v6, %v206_v16 }
 0x2f7   :  { %v1535_v18 = vpop.eup %1534  ;;  %v211_v19 = vmul.f32 1.442695, %v208_v17 }
 0x2f8   :  { %v213_v20 = vsel %vm200_vm9, %v1535_v18, 0.0 }
 0x2f9   :  { %1536 = vpow2.f32 %v211_v19  ;;  %214 = vadd.xlane.f32.xlu2 %v213_v20 }
 0x2ff   :  { %v1537_v21 = vpop.eup %1536 }
 0x300   :  { %v216_v22 = vsel %vm200_vm9, %v1537_v21, 0.0 }
 0x301   :  { %217 = vadd.xlane.f32.xlu2 %v216_v22 }
 0x304   :  { %v396_v23 = vpop.xlane.xlu1 %395 }
 0x305   :  { %v400_v24 = vsub.f32 %v392_v11, %v396_v23 }
 0x307   :  { %v402_v25 = vmul.f32 1.442695, %v400_v24  ;;  %v250_v26 = vpop.permute.xlu0 %249 }
 0x308   :  { %270 = vmatpush.msra.mxu3 %v250_v26 }
 0x309   :  { %1538 = vpow2.f32 %v402_v25 }
 0x30a   :  { %296 = vmatpush.msrb.mxu3 %v276_v27  ;;  %v1759_v27 = vld [vmem:[%s1948_s3 + $0x1] ss:$0 sm:$0xff] }
 0x30f   :  { %v1737_v28 = vpop.eup %1538  ;;  %v363_v1 = vpop.permute.xlu0 %362 }
 0x310   :  { %v406_v29 = vsel %vm200_vm9, %v1737_v28, 0.0 }
 0x311   :  { %407 = vadd.xlane.f32.xlu2 %v406_v29 }
 0x31c   :  { %v365_v48 = vpop.permute.xlu1 %364 }
 0x329   :  { %442 = vrot.lane.b32.xlu2 %v1698_v55, %s1630_s1 }
 0x331   :  { %468 = vrot.lane.b32.xlu2 %v133_v57, %s1630_s1 }
 0x36c   :  { %v215_v30 = vpop.xlane.xlu2 %214 }
 0x36d   :  { %1540 = vrcp.f32 %v215_v30  ;;  %v230_v35 = vand.u32 2147483648, %v215_v30  ;;  %v228_v37 = vand.u32 2147483647, %v215_v30  ;;  %vm224_vm11 = vweird.f32 %v215_v30 }
 0x36f   :  { %v231_v41 = vor.u32 1.1754944e-38, %v230_v35  ;;  %vm229_vm13 = vcmp.eq.f32.partialorder %v228_v37, 8.507059e+37 }
 0x373   :  { %v1541_v31 = vpop.eup %1540 }
 0x374   :  { %v220_v32 = vmul.f32 %v1541_v31, %v215_v30  ;;  %v218_v33 = vpop.xlane.xlu2 %217  ;;  %vm225_vm10 = vweird.f32 %v1541_v31 }
 0x375   :  { %1542 = vrcp.f32 %v218_v33  ;;  %vm226_vm12 = vmor %vm224_vm11, %vm225_vm10  ;;  %v245_v50 = vand.u32 2147483648, %v218_v33  ;;  %v243_v51 = vand.u32 2147483647, %v218_v33  ;;  %vm239_vm15 = vweird.f32 %v218_v33 }
 0x376   :  { %v221_v34 = vsub.f32 1.0, %v220_v32 }
 0x377   :  { %v246_v54 = vor.u32 1.1754944e-38, %v245_v50  ;;  %vm244_vm2 = vcmp.eq.f32.partialorder %v243_v51, 8.507059e+37  ;;  %v584_v51 = vld [vmem:[#allocation2 + $0x58] sm:$0xff] }
 0x378   :  { %v222_v36 = vmul.f32 %v1541_v31, %v221_v34  ;;  %613 = vmatpush.msrb.mxu1 %v584_v51 }
 0x37a   :  { %v223_v39 = vadd.f32 %v1541_v31, %v222_v36 }
 0x37b   :  { %v1543_v40 = vpop.eup %1542 }
 0x37c   :  { %v235_v42 = vmul.f32 %v1543_v40, %v218_v33  ;;  %v227_v43 = vsel %vm226_vm12, %v1541_v31, %v223_v39  ;;  %vm240_vm14 = vweird.f32 %v1543_v40 }
 0x37d   :  { %v232_v44 = vsel %vm229_vm13, %v231_v41, %v227_v43  ;;  %vm241_vm1 = vmor %vm239_vm15, %vm240_vm14 }
 0x37e   :  { %v236_v45 = vsub.f32 1.0, %v235_v42  ;;  %v233_v46 = vmul.f32 %v1535_v18, %v232_v44 }
 0x380   :  { %v237_v49 = vmul.f32 %v1543_v40, %v236_v45  ;;  %1448 = vmatmul.msk.f32.vlgmr.msra.gmra.mxu3 %vm200_vm9, %v233_v46 }
 0x381   :  { %1454 = vmatpush.xpose.msk.msra.mxu3 %vm138_vm8, %v365_v48 }
 0x382   :  { %v238_v53 = vadd.f32 %v1543_v40, %v237_v49 }
 0x384   :  { %v408_v55 = vpop.xlane.xlu2 %407  ;;  %v242_v56 = vsel %vm241_vm1, %v1543_v40, %v238_v53  ;;  %v583_v53 = vld [vmem:[#allocation2 + $0x50] sm:$0xff]  ;;  %vm644_vm1 = vcmask 523264  }
 0x385   :  { %1544 = vrcp.f32 %v408_v55  ;;  %v247_v57 = vsel %vm244_vm2, %v246_v54, %v242_v56  ;;  %v423_v0 = vand.u32 2147483648, %v408_v55  ;;  %v421_v4 = vand.u32 2147483647, %v408_v55  ;;  %v582_v54 = vld [vmem:[#allocation2 + $0x48] sm:$0xff]  ;;  %614 = vmatpush.msrb.mxu1 %v583_v53 }
 0x386   :  { %v248_v58 = vmul.f32 %v1537_v21, %v247_v57  ;;  %vm417_vm4 = vweird.f32 %v408_v55 }
 0x387   :  { %v424_v6 = vor.u32 1.1754944e-38, %v423_v0  ;;  %vm422_vm6 = vcmp.eq.f32.partialorder %v421_v4, 8.507059e+37  ;;  %615 = vmatpush.msrb.mxu1 %v582_v54  ;;  %v1772_v4 = vld [vmem:[%s1948_s3 + $0x4] ss:$0 sm:$0xff] }
 0x388   :  { %1449 = vmatmul.msk.f32.vlgmr.msrb.gmra.mxu3 %vm200_vm9, %v248_v58 }
 0x389   :  { %516 = vmatpush.msrb.mxu3 %v495_v13  ;;  %v590_v13 = vld [vmem:[#allocation2 + $0x88] sm:$0xff] }
 0x38b   :  { %v1545_v59 = vpop.eup %1544  ;;  %517 = vmatpush.msrb.mxu3 %v494_v14 }
 0x38c   :  { %v413_v60 = vmul.f32 %v1545_v59, %v408_v55  ;;  %v443_v61 = vpop.permute.xlu2 %442  ;;  %vm418_vm3 = vweird.f32 %v1545_v59  ;;  %v581_v55 = vld [vmem:[#allocation2 + $0x40] sm:$0xff] }
 0x38d   :  { %463 = vmatpush.msrb.mxu2 %v443_v61  ;;  %vm419_vm5 = vmor %vm417_vm4, %vm418_vm3  ;;  %616 = vmatpush.msrb.mxu1 %v581_v55 }
 0x38e   :  { %v414_v63 = vsub.f32 1.0, %v413_v60 }
 0x390   :  { %v415_v2 = vmul.f32 %v1545_v59, %v414_v63  ;;  %1455 = vmatmul.msk.f32.vlgmr.msra.gmra.mxu3 %vm138_vm8, %v363_v1 }
 0x392   :  { %v416_v5 = vadd.f32 %v1545_v59, %v415_v2 }
 0x394   :  { %v420_v7 = vsel %vm419_vm5, %v1545_v59, %v416_v5  ;;  %v469_v8 = vpop.permute.xlu2 %468 }
 0x395   :  { %v425_v9 = vsel %vm422_vm6, %v424_v6, %v420_v7  ;;  %489 = vmatpush.msrb.mxu0 %v469_v8  ;;  %v1777_v7 = vld [vmem:[%s1948_s3 + $0x5] ss:$0 sm:$0xff] }
 0x396   :  { %v426_v11 = vmul.f32 %v1737_v28, %v425_v9 }
 0x398   :  { %1456 = vmatmul.msk.f32.vlgmr.msrb.gmra.mxu2 %vm200_vm9, %v426_v11  ;;  %v592_v11 = vld [vmem:[#allocation2 + $0x98] sm:$0xff] }
 0x399   :  { %659 = vmatpush.msra.mxu2 %v592_v11  ;;  %v731_v11 = vld [vmem:[#allocation2 + $0xb0] sm:$0xff] }
 0x39b   :  { %660 = vmatpush.msra.mxu2 %v591_v12  ;;  %v729_v12 = vld [vmem:[#allocation2 + $0xa0] sm:$0xff] }
 0x39d   :  { %661 = vmatpush.msra.mxu2 %v590_v13 }
 0x403   :  { %v272_v15 = vpop.f32.mrf.mxu3 }
 0x404   :  { %1450 = vmatmul.msk.f32.vlgmr.msra.gmra.mxu1 %vm138_vm8, %v272_v15  ;;  %v589_v15 = vld [vmem:[#allocation2 + $0x80] sm:$0xff] }
 0x405   :  { %662 = vmatpush.msra.mxu2 %v589_v15 }
 0x40b   :  { %v298_v16 = vpop.f32.mrf.mxu3 }
 0x40c   :  { %1451 = vmatmul.msk.f32.gmra.mxu1 %vm138_vm8, %v298_v16  ;;  %v588_v16 = vld [vmem:[#allocation2 + $0x78] sm:$0xff] }
 0x40d   :  { %663 = vmatpush.msra.mxu2 %v588_v16 }
 0x413   :  { %v387_v17 = vpop.f32.mrf.mxu3 }
 0x414   :  { %v391_v18 = vmul.f32 0.25, %v387_v17 }
 0x416   :  { %v393_v19 = vadd.f32 %v1724_v3, %v391_v18 }
 0x418   :  { %v397_v20 = vsel %vm200_vm9, %v393_v19, -inf }
 0x419   :  { %398 = vmax.xlane.f32.xlu0 %v397_v20 }
 0x41b   :  { %v465_v21 = vpop.f32.mrf.mxu2 }
 0x41c   :  { %1458 = vmatmul.msk.f32.vlgmr.msrb.gmra.mxu3 %vm138_vm8, %v465_v21  ;;  %v586_v21 = vld [vmem:[#allocation2 + $0x68] sm:$0xff] }
 0x481   :  { %v328_v28 = vpop.f32.mrf.mxu1 }
 0x482   :  { %v329_v29 = vadd.f32 %v1759_v27, %v328_v28 }
 0x489   :  { %v331_v14 = vpop.f32.mrf.mxu1 }
 0x48a   :  { %v332_v17 = vadd.f32 %v1759_v27, %v331_v14 }
 0x48c   :  { %v399_v22 = vpop.xlane.xlu0 %398 }
 0x48d   :  { %v401_v23 = vsub.f32 %v393_v19, %v399_v22  ;;  %v587_v19 = vld [vmem:[#allocation2 + $0x70] sm:$0xff] }
 0x48e   :  { %664 = vmatpush.msra.mxu2 %v587_v19 }
 0x48f   :  { %v404_v24 = vmul.f32 1.442695, %v401_v23  ;;  %v585_v23 = vld [vmem:[#allocation2 + $0x60] sm:$0xff] }
 0x490   :  { %665 = vmatpush.msra.mxu2 %v586_v21 }
 0x491   :  { %1546 = vpow2.f32 %v404_v24 }
 0x492   :  { %666 = vmatpush.msra.mxu2 %v585_v23 }
 0x497   :  { %v1547_v25 = vpop.eup %1546 }
 0x498   :  { %v409_v26 = vsel %vm200_vm9, %v1547_v25, 0.0 }
 0x499   :  { %410 = vadd.xlane.f32.xlu1 %v409_v26 }
 0x49f   :  { %v519_v30 = vpop.f32.mrf.mxu3 }
 0x4a0   :  { %v525_v31 = vadd.f32 %v519_v30, %v329_v29 }
 0x4a2   :  { %v527_v32 = vadd.f32 %v525_v31, %v1687_v47 }
 0x4a4   :  { %v531_v33 = vsel %vm42_vm0, %v527_v32, 0.0 }
 0x4a5   :  { %532 = vadd.xlane.f32.xlu2 %v531_v33 }
 0x50c   :  { %v411_v34 = vpop.xlane.xlu1 %410 }
 0x50d   :  { %1548 = vrcp.f32 %v411_v34  ;;  %v438_v38 = vand.u32 2147483648, %v411_v34  ;;  %v436_v41 = vand.u32 2147483647, %v411_v34  ;;  %vm432_vm10 = vweird.f32 %v411_v34 }
 0x50f   :  { %v439_v47 = vor.u32 1.1754944e-38, %v438_v38  ;;  %vm437_vm12 = vcmp.eq.f32.partialorder %v436_v41, 8.507059e+37  ;;  %v1794_v41 = vld [vmem:[%s1948_s3 + $0x3] ss:$0 sm:$0xff] }
 0x513   :  { %v1549_v35 = vpop.eup %1548 }
 0x514   :  { %v428_v36 = vmul.f32 %v1549_v35, %v411_v34  ;;  %vm433_vm7 = vweird.f32 %v1549_v35 }
 0x515   :  { %vm434_vm11 = vmor %vm432_vm10, %vm433_vm7 }
 0x516   :  { %v429_v37 = vsub.f32 1.0, %v428_v36 }
 0x518   :  { %v533_v39 = vpop.xlane.xlu2 %532  ;;  %v430_v40 = vmul.f32 %v1549_v35, %v429_v37 }
 0x519   :  { %v537_v42 = vmul.f32 %v533_v39, %v1673_v10 }
 0x51a   :  { %v431_v43 = vadd.f32 %v1549_v35, %v430_v40 }
 0x51b   :  { %v539_v44 = vsub.f32 %v527_v32, %v537_v42 }
 0x51c   :  { %v435_v45 = vsel %vm434_vm11, %v1549_v35, %v431_v43 }
 0x51d   :  { %v541_v46 = vmul.f32 %v539_v44, %v539_v44  ;;  %v440_v48 = vsel %vm437_vm12, %v439_v47, %v435_v45 }
 0x51e   :  { %v441_v49 = vmul.f32 %v1547_v25, %v440_v48  ;;  %v1513_v25 = vld [vmem:[%s1948_s3 + $0x2] ss:$0 sm:$0xff] }
 0x51f   :  { %v543_v50 = vsel %vm42_vm0, %v541_v46, 0.0 }
 0x520   :  { %544 = vadd.xlane.f32.xlu0 %v543_v50  ;;  %1457 = vmatmul.msk.f32.vlgmr.msrb.gmra.mxu0 %vm200_vm9, %v441_v49 }
 0x593   :  { %v545_v56 = vpop.xlane.xlu0 %544 }
 0x594   :  { %v549_v57 = vmul.f32 %v545_v56, %v1673_v10 }
 0x596   :  { %v551_v58 = vadd.f32 1e-12, %v549_v57 }
 0x598   :  { %1550 = vrsqrt.f32 %v551_v58  ;;  %vm559_vm14 = vweird.f32 %v551_v58 }
 0x59d   :  { %v491_v60 = vpop.f32.mrf.mxu0 }
 0x59e   :  { %v1551_v59 = vpop.eup %1550  ;;  %1459 = vmatmul.msk.f32.gmra.mxu3 %vm138_vm8, %v491_v60 }
 0x59f   :  { %v554_v61 = vmul.f32 %v1551_v59, %v551_v58  ;;  %vm560_vm13 = vweird.f32 %v1551_v59 }
 0x5a0   :  { %vm561_vm15 = vmor %vm559_vm14, %vm560_vm13 }
 0x5a1   :  { %v555_v63 = vmul.f32 %v1551_v59, %v554_v61 }
 0x5a3   :  { %v556_v0 = vmul.f32 0.5, %v555_v63 }
 0x5a5   :  { %v557_v1 = vsub.f32 1.5, %v556_v0 }
 0x5a7   :  { %v558_v2 = vmul.f32 %v1551_v59, %v557_v1 }
 0x5a9   :  { %v562_v5 = vsel %vm561_vm15, %v1551_v59, %v558_v2 }
 0x5aa   :  { %v573_v6 = vmul.f32 %v562_v5, %v539_v44 }
 0x5ac   :  { %v576_v8 = vmul.f32 %v1772_v4, %v573_v6 }
 0x5ae   :  { %v579_v9 = vadd.f32 %v1777_v7, %v576_v8  ;;  %v732_v8 = vld [vmem:[#allocation2 + $0xb8] sm:$0xff] }
 0x5af   :  { %754 = vmatpush.msra.mxu0 %v732_v8 }
 0x5b0   :  { %1460 = vmatmul.msk.f32.vlgmr.msrb.gmra.mxu1 %vm42_vm0, %v579_v9 }
 0x5b1   :  { %755 = vmatpush.msra.mxu0 %v731_v11 }
 0x621   :  { %v522_v18 = vpop.f32.mrf.mxu3 }
 0x622   :  { %v526_v20 = vadd.f32 %v522_v18, %v332_v17 }
 0x624   :  { %v528_v22 = vadd.f32 %v526_v20, %v1691_v52 }
 0x626   :  { %v534_v24 = vsel %vm42_vm0, %v528_v22, 0.0 }
 0x627   :  { %535 = vadd.xlane.f32.xlu1 %v534_v24 }
 0x62d   :  { %v618_v26 = vpop.f32.mrf.mxu1 }
 0x62e   :  { %v619_v27 = vadd.f32 %v1513_v25, %v618_v26 }
 0x630   :  { %v624_v28 = vmul.f32 %v619_v27, %v619_v27 }
 0x632   :  { %v626_v29 = vmul.f32 %v624_v28, %v619_v27  ;;  %v1515_v28 = vld [vmem:[%s1948_s3 + $0x6] ss:$0 sm:$0xff] }
 0x634   :  { %v628_v30 = vmul.f32 0.044715, %v626_v29 }
 0x636   :  { %v630_v31 = vadd.f32 %v628_v30, %v619_v27 }
 0x638   :  { %v632_v32 = vmul.f32 0.7978846, %v630_v31  ;;  %v1516_v31 = vld [vmem:[%s1948_s3 + $0x7] ss:$0 sm:$0xff] }
 0x63a   :  { %1552 = vtanh.f32 %v632_v32 }
 0x640   :  { %v1553_v33 = vpop.eup %1552 }
 0x641   :  { %v636_v52 = vadd.f32 1.0, %v1553_v33 }
 0x643   :  { %v638_v34 = vmul.f32 0.5, %v636_v52 }
 0x645   :  { %v640_v35 = vmul.f32 %v638_v34, %v619_v27 }
 0x647   :  { %1462 = vmatmul.msk.f32.vlgmr.msra.gmra.mxu2 %vm644_vm1, %v640_v35 }
 0x69a   :  { %v536_v36 = vpop.xlane.xlu1 %535 }
 0x69b   :  { %v538_v37 = vmul.f32 %v536_v36, %v1673_v10 }
 0x69d   :  { %v540_v38 = vsub.f32 %v528_v22, %v538_v37  ;;  %v1517_v37 = vld [vmem:[%s1948_s3 + $0x8] ss:$0 sm:$0xff] }
 0x69f   :  { %v542_v39 = vmul.f32 %v540_v38, %v540_v38 }
 0x6a1   :  { %v546_v40 = vsel %vm42_vm0, %v542_v39, 0.0 }
 0x6a2   :  { %547 = vadd.xlane.f32.xlu0 %v546_v40 }
 0x6ca   :  { %v668_v42 = vpop.f32.mrf.mxu2 }
 0x6cb   :  { %v669_v43 = vadd.f32 %v1794_v41, %v668_v42 }
 0x6cd   :  { %v674_v44 = vadd.f32 %v669_v43, %v579_v9 }
 0x6cf   :  { %v678_v47 = vsel %vm42_vm0, %v674_v44, 0.0 }
 0x6d0   :  { %679 = vadd.xlane.f32.xlu1 %v678_v47 }
 0x715   :  { %v548_v45 = vpop.xlane.xlu0 %547 }
 0x716   :  { %v550_v46 = vmul.f32 %v548_v45, %v1673_v10 }
 0x718   :  { %v552_v48 = vadd.f32 1e-12, %v550_v46 }
 0x71a   :  { %1554 = vrsqrt.f32 %v552_v48  ;;  %vm569_vm3 = vweird.f32 %v552_v48 }
 0x720   :  { %v1555_v49 = vpop.eup %1554 }
 0x721   :  { %v564_v50 = vmul.f32 %v1555_v49, %v552_v48  ;;  %vm570_vm2 = vweird.f32 %v1555_v49 }
 0x722   :  { %vm571_vm4 = vmor %vm569_vm3, %vm570_vm2 }
 0x723   :  { %v565_v51 = vmul.f32 %v1555_v49, %v564_v50 }
 0x725   :  { %v566_v53 = vmul.f32 0.5, %v565_v51 }
 0x727   :  { %v567_v54 = vsub.f32 1.5, %v566_v53 }
 0x729   :  { %v568_v55 = vmul.f32 %v1555_v49, %v567_v54 }
 0x72b   :  { %v572_v56 = vsel %vm571_vm4, %v1555_v49, %v568_v55 }
 0x72c   :  { %v574_v57 = vmul.f32 %v572_v56, %v540_v38 }
 0x72e   :  { %v577_v58 = vmul.f32 %v1772_v4, %v574_v57 }
 0x730   :  { %v580_v59 = vadd.f32 %v1777_v7, %v577_v58  ;;  %v730_v7 = vld [vmem:[#allocation2 + $0xa8] sm:$0xff] }
 0x731   :  { %756 = vmatpush.msra.mxu0 %v730_v7 }
 0x732   :  { %1461 = vmatmul.msk.f32.gmra.mxu1 %vm42_vm0, %v580_v59 }
 0x733   :  { %757 = vmatpush.msra.mxu0 %v729_v12 }
 0x743   :  { %v680_v60 = vpop.xlane.xlu1 %679 }
 0x744   :  { %v684_v61 = vmul.f32 %v680_v60, %v1673_v10 }
 0x746   :  { %v686_v63 = vsub.f32 %v674_v44, %v684_v61 }
 0x748   :  { %v688_v0 = vmul.f32 %v686_v63, %v686_v63 }
 0x74a   :  { %v690_v1 = vsel %vm42_vm0, %v688_v0, 0.0 }
 0x74b   :  { %691 = vadd.xlane.f32.xlu2 %v690_v1 }
 0x7af   :  { %v621_v2 = vpop.f32.mrf.mxu1 }
 0x7b0   :  { %v622_v5 = vadd.f32 %v1513_v25, %v621_v2 }
 0x7b2   :  { %v625_v6 = vmul.f32 %v622_v5, %v622_v5 }
 0x7b4   :  { %v627_v9 = vmul.f32 %v625_v6, %v622_v5 }
 0x7b6   :  { %v629_v4 = vmul.f32 0.044715, %v627_v9 }
 0x7b8   :  { %v631_v13 = vadd.f32 %v629_v4, %v622_v5 }
 0x7ba   :  { %v633_v14 = vmul.f32 0.7978846, %v631_v13 }
 0x7bc   :  { %1556 = vtanh.f32 %v633_v14 }
 0x7be   :  { %v692_v15 = vpop.xlane.xlu2 %691 }
 0x7bf   :  { %v696_v16 = vmul.f32 %v692_v15, %v1673_v10 }
 0x7c1   :  { %v698_v17 = vadd.f32 1e-12, %v696_v16 }
 0x7c2   :  { %v1557_v18 = vpop.eup %1556 }
 0x7c3   :  { %1558 = vrsqrt.f32 %v698_v17  ;;  %v637_v19 = vadd.f32 1.0, %v1557_v18  ;;  %vm706_vm6 = vweird.f32 %v698_v17 }
 0x7c5   :  { %v639_v20 = vmul.f32 0.5, %v637_v19 }
 0x7c7   :  { %v641_v21 = vmul.f32 %v639_v20, %v622_v5 }
 0x7c9   :  { %v1559_v22 = vpop.eup %1558  ;;  %1463 = vmatmul.msk.f32.gmra.mxu2 %vm644_vm1, %v641_v21 }
 0x7ca   :  { %v701_v23 = vmul.f32 %v1559_v22, %v698_v17  ;;  %vm707_vm5 = vweird.f32 %v1559_v22 }
 0x7cb   :  { %vm708_vm7 = vmor %vm706_vm6, %vm707_vm5 }
 0x7cc   :  { %v702_v24 = vmul.f32 %v1559_v22, %v701_v23 }
 0x7ce   :  { %v703_v25 = vmul.f32 0.5, %v702_v24 }
 0x7d0   :  { %v704_v26 = vsub.f32 1.5, %v703_v25 }
 0x7d2   :  { %v705_v27 = vmul.f32 %v1559_v22, %v704_v26 }
 0x7d4   :  { %v709_v29 = vsel %vm708_vm7, %v1559_v22, %v705_v27 }
 0x7d5   :  { %v720_v30 = vmul.f32 %v709_v29, %v686_v63  ;;  %v923_v29 = vld [vmem:[#allocation2 + $0xc0] sm:$0xff] }
 0x7d7   :  { %v723_v32 = vmul.f32 %v1515_v28, %v720_v30 }
 0x7d9   :  { %v1812_v33 = vadd.f32 %v1516_v31, %v723_v32 }
 0x7db   :  { %1465 = vmatmul.msk.f32.vlgmr.msra.gmra.mxu0 %vm42_vm0, %v1812_v33 }
 0x84c   :  { %v671_v52 = vpop.f32.mrf.mxu2 }
 0x84d   :  { %v672_v34 = vadd.f32 %v1794_v41, %v671_v52 }
 0x84f   :  { %v675_v35 = vadd.f32 %v672_v34, %v580_v59 }
 0x851   :  { %v681_v36 = vsel %vm42_vm0, %v675_v35, 0.0 }
 0x852   :  { %682 = vadd.xlane.f32.xlu0 %v681_v36 }
 0x858   :  { %v759_v38 = vpop.f32.mrf.mxu0 }
 0x859   :  { %v1821_v39 = vadd.f32 %v1517_v37, %v759_v38 }
 0x85b   :  { %766 = vrot.lane.b32.xlu1 %v1821_v39, %s1627_s9 }
 0x863   :  { %956 = vrot.lane.b32.xlu1 %v1821_v39, %s1628_s10 }
 0x86b   :  { %871 = vrot.lane.b32.xlu1 %v1821_v39, %s1629_s15 }
 0x8c5   :  { %v683_v40 = vpop.xlane.xlu0 %682 }
 0x8c6   :  { %v685_v41 = vmul.f32 %v683_v40, %v1673_v10 }
 0x8c8   :  { %v687_v42 = vsub.f32 %v675_v35, %v685_v41 }
 0x8ca   :  { %v689_v43 = vmul.f32 %v687_v42, %v687_v42 }
 0x8cc   :  { %v693_v47 = vsel %vm42_vm0, %v689_v43, 0.0 }
 0x8cd   :  { %v767_v44 = vpop.permute.xlu1 %766  ;;  %694 = vadd.xlane.f32.xlu2 %v693_v47 }
 0x8ce   :  { %1467 = vmatpush.xpose.msk.msra.mxu3 %vm138_vm8, %v767_v44 }
 0x8d1   :  { %1468 = vmatmul.msk.f32.vlgmr.msra.gmra.mxu3 %vm138_vm8, %v1821_v39 }
 0x8d5   :  { %v957_v45 = vpop.permute.xlu1 %956 }
 0x8dd   :  { %v872_v46 = vpop.permute.xlu1 %871 }
 0x8de   :  { %892 = vmatpush.msrb.mxu0 %v872_v46 }
 0x940   :  { %v695_v48 = vpop.xlane.xlu2 %694 }
 0x941   :  { %v697_v49 = vmul.f32 %v695_v48, %v1673_v10 }
 0x943   :  { %v699_v50 = vadd.f32 1e-12, %v697_v49 }
 0x945   :  { %1560 = vrsqrt.f32 %v699_v50  ;;  %vm716_vm11 = vweird.f32 %v699_v50 }
 0x94b   :  { %v1561_v51 = vpop.eup %1560 }
 0x94c   :  { %v711_v53 = vmul.f32 %v1561_v51, %v699_v50  ;;  %vm717_vm10 = vweird.f32 %v1561_v51 }
 0x94d   :  { %vm718_vm12 = vmor %vm716_vm11, %vm717_vm10 }
 0x94e   :  { %v712_v54 = vmul.f32 %v1561_v51, %v711_v53 }
 0x950   :  { %v713_v55 = vmul.f32 0.5, %v712_v54 }
 0x952   :  { %v714_v56 = vsub.f32 1.5, %v713_v55 }
 0x954   :  { %v789_v57 = vpop.f32.mrf.mxu3  ;;  %v715_v58 = vmul.f32 %v1561_v51, %v714_v56 }
 0x955   :  { %v819_v59 = vmul.f32 0.25, %v789_v57 }
 0x956   :  { %v719_v60 = vsel %vm718_vm12, %v1561_v51, %v715_v58 }
 0x957   :  { %v821_v61 = vadd.f32 %v1717_v62, %v819_v59  ;;  %v721_v63 = vmul.f32 %v719_v60, %v687_v42 }
 0x959   :  { %v823_v0 = vsel %vm200_vm9, %v821_v61, -inf  ;;  %v724_v1 = vmul.f32 %v1515_v28, %v721_v63  ;;  %v924_v28 = vld [vmem:[#allocation2 + $0xc8] sm:$0xff] }
 0x95a   :  { %824 = vmax.xlane.f32.xlu0 %v823_v0 }
 0x95b   :  { %v1837_v2 = vadd.f32 %v1516_v31, %v724_v1 }
 0x95d   :  { %1466 = vmatmul.msk.f32.gmra.mxu0 %vm42_vm0, %v1837_v2 }
 0x9cd   :  { %v825_v5 = vpop.xlane.xlu0 %824 }
 0x9ce   :  { %v829_v6 = vsub.f32 %v821_v61, %v825_v5 }
 0x9d0   :  { %v831_v8 = vmul.f32 1.442695, %v829_v6 }
 0x9d2   :  { %1562 = vpow2.f32 %v831_v8 }
 0x9d8   :  { %v1563_v9 = vpop.eup %1562 }
 0x9d9   :  { %v835_v11 = vsel %vm200_vm9, %v1563_v9, 0.0 }
 0x9da   :  { %836 = vadd.xlane.f32.xlu2 %v835_v11  ;;  %v762_v4 = vpop.f32.mrf.mxu0 }
 0x9db   :  { %v1842_v7 = vadd.f32 %v1517_v37, %v762_v4 }
 0x9dd   :  { %984 = vrot.lane.b32.xlu1 %v1842_v7, %s1628_s10  ;;  %793 = vrot.lane.b32.xlu0 %v1842_v7, %s1627_s9 }
 0x9e5   :  { %986 = vrot.lane.b32.xlu0 %v1842_v7, %s1626_s8 }
 0x9f2   :  { %958 = vrot.lane.b32.xlu2 %v1821_v39, %s1626_s8 }
 0xa4d   :  { %v837_v12 = vpop.xlane.xlu2 %836 }
 0xa4e   :  { %1564 = vrcp.f32 %v837_v12  ;;  %v852_v18 = vand.u32 2147483648, %v837_v12  ;;  %v850_v21 = vand.u32 2147483647, %v837_v12  ;;  %vm846_vm14 = vweird.f32 %v837_v12 }
 0xa4f   :  { %v794_v13 = vpop.permute.xlu0 %793  ;;  %v985_v27 = vpop.permute.xlu1 %984 }
 0xa50   :  { %1469 = vmatpush.xpose.msk.msra.mxu1 %vm138_vm8, %v794_v13  ;;  %v853_v23 = vor.u32 1.1754944e-38, %v852_v18  ;;  %vm851_vm2 = vcmp.eq.f32.partialorder %v850_v21, 8.507059e+37 }
 0xa53   :  { %1470 = vmatmul.msk.f32.vlgmr.msra.gmra.mxu1 %vm138_vm8, %v1842_v7 }
 0xa54   :  { %v1565_v14 = vpop.eup %1564  ;;  %947 = vmatpush.msrb.mxu1 %v924_v28 }
 0xa55   :  { %v842_v15 = vmul.f32 %v1565_v14, %v837_v12  ;;  %v959_v16 = vpop.permute.xlu2 %958  ;;  %vm847_vm13 = vweird.f32 %v1565_v14 }
 0xa56   :  { %1476 = vmatpush.xpose.msk.msrb.mxu2 %vm138_vm8, %v959_v16  ;;  %vm848_vm15 = vmor %vm846_vm14, %vm847_vm13  ;;  %948 = vmatpush.msrb.mxu1 %v923_v29 }
 0xa57   :  { %v843_v17 = vsub.f32 1.0, %v842_v15  ;;  %v987_v19 = vpop.permute.xlu0 %986 }
 0xa58   :  { %1478 = vmatpush.xpose.msk.msra.mxu0 %vm138_vm8, %v987_v19 }
 0xa59   :  { %v844_v20 = vmul.f32 %v1565_v14, %v843_v17  ;;  %1477 = vmatmul.msk.f32.vlgmr.msrb.gmra.mxu2 %vm138_vm8, %v957_v45 }
 0xa5b   :  { %v845_v22 = vadd.f32 %v1565_v14, %v844_v20 }
 0xa5d   :  { %v849_v24 = vsel %vm848_vm15, %v1565_v14, %v845_v22 }
 0xa5e   :  { %v854_v25 = vsel %vm851_vm2, %v853_v23, %v849_v24 }
 0xa5f   :  { %v855_v26 = vmul.f32 %v1563_v9, %v854_v25 }
 0xa61   :  { %1471 = vmatmul.msk.f32.vlgmr.msrb.gmra.mxu0 %vm200_vm9, %v855_v26 }
 0xa69   :  { %1479 = vmatmul.msk.f32.vlgmr.msra.gmra.mxu0 %vm138_vm8, %v985_v27 }
 0xad0   :  { %v816_v30 = vpop.f32.mrf.mxu1 }
 0xad1   :  { %v820_v31 = vmul.f32 0.25, %v816_v30 }
 0xad3   :  { %v822_v32 = vadd.f32 %v1724_v3, %v820_v31 }
 0xad5   :  { %v826_v52 = vsel %vm200_vm9, %v822_v32, -inf }
 0xad6   :  { %827 = vmax.xlane.f32.xlu0 %v826_v52 }
 0xadc   :  { %v981_v34 = vpop.f32.mrf.mxu2 }
 0xadd   :  { %v1012_v35 = vmul.f32 0.25, %v981_v34 }
 0xade   :  { %v894_v36 = vpop.f32.mrf.mxu0 }
 0xadf   :  { %1474 = vmatmul.msk.f32.vlgmr.msrb.gmra.mxu1 %vm138_vm8, %v894_v36  ;;  %v1014_v37 = vadd.f32 %v1717_v62, %v1012_v35  ;;  %v1117_v36 = vld [vmem:[#allocation2 + $0xd8] sm:$0xff] }
 0xae0   :  { %1138 = vmatpush.msrb.mxu0 %v1117_v36  ;;  %v1211_v36 = vld [vmem:[#allocation2 + $0x120] sm:$0xff] }
 0xae1   :  { %v1016_v38 = vsel %vm200_vm9, %v1014_v37, -inf }
 0xae2   :  { %1017 = vmax.xlane.f32.xlu2 %v1016_v38 }
 0xae6   :  { %v1009_v40 = vpop.f32.mrf.mxu0 }
 0xae7   :  { %v1013_v41 = vmul.f32 0.25, %v1009_v40 }
 0xae9   :  { %v1015_v42 = vadd.f32 %v1724_v3, %v1013_v41 }
 0xaeb   :  { %v1019_v43 = vsel %vm200_vm9, %v1015_v42, -inf }
 0xaec   :  { %1020 = vmax.xlane.f32.xlu1 %v1019_v43 }
 0xb49   :  { %v828_v44 = vpop.xlane.xlu0 %827 }
 0xb4a   :  { %v830_v47 = vsub.f32 %v822_v32, %v828_v44 }
 0xb4c   :  { %v833_v45 = vmul.f32 1.442695, %v830_v47 }
 0xb4e   :  { %1566 = vpow2.f32 %v833_v45 }
 0xb54   :  { %v1567_v46 = vpop.eup %1566 }
 0xb55   :  { %v1018_v48 = vpop.xlane.xlu2 %1017  ;;  %v838_v50 = vsel %vm200_vm9, %v1567_v46, 0.0 }
 0xb56   :  { %v1022_v49 = vsub.f32 %v1014_v37, %v1018_v48  ;;  %839 = vadd.xlane.f32.xlu0 %v838_v50  ;;  %v1116_v37 = vld [vmem:[#allocation2 + $0xd0] sm:$0xff] }
 0xb57   :  { %1139 = vmatpush.msrb.mxu0 %v1116_v37  ;;  %v1210_v37 = vld [vmem:[#allocation2 + $0x118] sm:$0xff] }
 0xb58   :  { %v1024_v62 = vmul.f32 1.442695, %v1022_v49 }
 0xb5a   :  { %1568 = vpow2.f32 %v1024_v62 }
 0xb5c   :  { %v950_v43 = vpop.f32.mrf.mxu1 }
 0xb5f   :  { %v1021_v51 = vpop.xlane.xlu1 %1020 }
 0xb60   :  { %v1569_v53 = vpop.eup %1568  ;;  %v1023_v54 = vsub.f32 %v1015_v42, %v1021_v51  ;;  %v1518_v42 = vld [vmem:[%s1948_s3 + $0x9] ss:$0 sm:$0xff] }
 0xb61   :  { %v1028_v3 = vsel %vm200_vm9, %v1569_v53, 0.0  ;;  %v951_v44 = vadd.f32 %v1518_v42, %v950_v43 }
 0xb62   :  { %v1026_v55 = vmul.f32 1.442695, %v1023_v54  ;;  %1029 = vadd.xlane.f32.xlu2 %v1028_v3 }
 0xb64   :  { %1570 = vpow2.f32 %v1026_v55 }
 0xb6a   :  { %v1869_v56 = vpop.eup %1570  ;;  %897 = vrot.lane.b32.xlu0 %v1842_v7, %s1629_s15 }
 0xb6b   :  { %v1031_v57 = vsel %vm200_vm9, %v1869_v56, 0.0 }
 0xb6c   :  { %1032 = vadd.xlane.f32.xlu1 %v1031_v57 }
 0xb7a   :  { %1064 = vrot.lane.b32.xlu2 %v1821_v39, %s1630_s1 }
 0xb85   :  { %1090 = vrot.lane.b32.xlu1 %v1842_v7, %s1630_s1 }
 0xbc9   :  { %v840_v58 = vpop.xlane.xlu0 %839 }
 0xbca   :  { %1572 = vrcp.f32 %v840_v58  ;;  %v867_v63 = vand.u32 2147483648, %v840_v58  ;;  %v865_v5 = vand.u32 2147483647, %v840_v58  ;;  %vm861_vm4 = vweird.f32 %v840_v58 }
 0xbcc   :  { %v868_v8 = vor.u32 1.1754944e-38, %v867_v63  ;;  %vm866_vm6 = vcmp.eq.f32.partialorder %v865_v5, 8.507059e+37  ;;  %v1203_v5 = vld [vmem:[#allocation2 + $0xe0] sm:$0xff] }
 0xbd0   :  { %v1573_v59 = vpop.eup %1572 }
 0xbd1   :  { %v857_v60 = vmul.f32 %v1573_v59, %v840_v58  ;;  %vm862_vm3 = vweird.f32 %v1573_v59 }
 0xbd2   :  { %vm863_vm5 = vmor %vm861_vm4, %vm862_vm3 }
 0xbd3   :  { %v858_v61 = vsub.f32 1.0, %v857_v60 }
 0xbd5   :  { %v1030_v0 = vpop.xlane.xlu2 %1029  ;;  %v859_v1 = vmul.f32 %v1573_v59, %v858_v61 }
 0xbd6   :  { %1574 = vrcp.f32 %v1030_v0  ;;  %v1045_v16 = vand.u32 2147483648, %v1030_v0  ;;  %v1043_v18 = vand.u32 2147483647, %v1030_v0  ;;  %vm1039_vm10 = vweird.f32 %v1030_v0 }
 0xbd7   :  { %v860_v6 = vadd.f32 %v1573_v59, %v859_v1  ;;  %v1204_v1 = vld [vmem:[#allocation2 + $0xe8] sm:$0xff] }
 0xbd8   :  { %v1046_v20 = vor.u32 1.1754944e-38, %v1045_v16  ;;  %vm1044_vm12 = vcmp.eq.f32.partialorder %v1043_v18, 8.507059e+37 }
 0xbd9   :  { %v864_v9 = vsel %vm863_vm5, %v1573_v59, %v860_v6 }
 0xbda   :  { %v869_v39 = vsel %vm866_vm6, %v868_v8, %v864_v9 }
 0xbdb   :  { %v870_v4 = vmul.f32 %v1567_v46, %v869_v39 }
 0xbdc   :  { %v1575_v11 = vpop.eup %1574  ;;  %v898_v12 = vpop.permute.xlu0 %897 }
 0xbdd   :  { %v1035_v7 = vmul.f32 %v1575_v11, %v1030_v0  ;;  %v1065_v13 = vpop.permute.xlu2 %1064  ;;  %918 = vmatpush.msrb.mxu3 %v898_v12  ;;  %vm1040_vm7 = vweird.f32 %v1575_v11  ;;  %v1205_v0 = vld [vmem:[#allocation2 + $0xf0] sm:$0xff] }
 0xbde   :  { %1472 = vmatmul.msk.f32.vlgmr.msrb.gmra.mxu3 %vm200_vm9, %v870_v4  ;;  %vm1041_vm11 = vmor %vm1039_vm10, %vm1040_vm7 }
 0xbdf   :  { %v1036_v14 = vsub.f32 1.0, %v1035_v7  ;;  %v1033_v15 = vpop.xlane.xlu1 %1032  ;;  %1085 = vmatpush.msra.mxu3 %v1065_v13 }
 0xbe0   :  { %1576 = vrcp.f32 %v1033_v15  ;;  %v1060_v29 = vand.u32 2147483648, %v1033_v15  ;;  %vm1054_vm14 = vweird.f32 %v1033_v15  ;;  %v1058_v30 = vand.u32 2147483647, %v1033_v15 }
 0xbe1   :  { %v1037_v17 = vmul.f32 %v1575_v11, %v1036_v14 }
 0xbe2   :  { %v1061_v32 = vor.u32 1.1754944e-38, %v1060_v29  ;;  %vm1059_vm2 = vcmp.eq.f32.partialorder %v1058_v30, 8.507059e+37 }
 0xbe3   :  { %v1038_v19 = vadd.f32 %v1575_v11, %v1037_v17  ;;  %v1519_v17 = vld [vmem:[%s1948_s3 + $0xc] ss:$0 sm:$0xff] }
 0xbe5   :  { %v1042_v21 = vsel %vm1041_vm11, %v1575_v11, %v1038_v19 }
 0xbe6   :  { %v1577_v22 = vpop.eup %1576  ;;  %v1047_v23 = vsel %vm1044_vm12, %v1046_v20, %v1042_v21  ;;  %v1520_v20 = vld [vmem:[%s1948_s3 + $0xd] ss:$0 sm:$0xff] }
 0xbe7   :  { %v1050_v24 = vmul.f32 %v1577_v22, %v1033_v15  ;;  %v1048_v25 = vmul.f32 %v1569_v53, %v1047_v23  ;;  %vm1055_vm13 = vweird.f32 %v1577_v22 }
 0xbe8   :  { %vm1056_vm15 = vmor %vm1054_vm14, %vm1055_vm13 }
 0xbe9   :  { %v1051_v26 = vsub.f32 1.0, %v1050_v24  ;;  %1480 = vmatmul.msk.f32.vlgmr.msra.gmra.mxu3 %vm200_vm9, %v1048_v25 }
 0xbeb   :  { %v1052_v27 = vmul.f32 %v1577_v22, %v1051_v26 }
 0xbed   :  { %v1053_v28 = vadd.f32 %v1577_v22, %v1052_v27 }
 0xbef   :  { %v1057_v31 = vsel %vm1056_vm15, %v1577_v22, %v1053_v28  ;;  %vm1396_vm15 = vcmask 254976  }
 0xbf0   :  { %v1062_v52 = vsel %vm1059_vm2, %v1061_v32, %v1057_v31 }
 0xbf1   :  { %v1063_v35 = vmul.f32 %v1869_v56, %v1062_v52  ;;  %v1214_v52 = vld [vmem:[#allocation2 + $0x138] sm:$0xff] }
 0xbf2   :  { %1280 = vmatpush.msra.mxu1 %v1214_v52 }
 0xbf7   :  { %v1091_v34 = vpop.permute.xlu1 %1090 }
 0xbf8   :  { %1111 = vmatpush.msra.mxu2 %v1091_v34  ;;  %v1213_v34 = vld [vmem:[#allocation2 + $0x130] sm:$0xff] }
 0xbf9   :  { %1481 = vmatmul.msk.f32.vlgmr.msra.gmra.mxu2 %vm200_vm9, %v1063_v35  ;;  %1281 = vmatpush.msra.mxu1 %v1213_v34  ;;  %v1212_v35 = vld [vmem:[#allocation2 + $0x128] sm:$0xff] }
 0xbfa   :  { %v1524_v34 = vld [vmem:[%s1948_s3 + $0xf] ss:$0 sm:$0xff] }
 0xbfb   :  { %1282 = vmatpush.msra.mxu1 %v1212_v35 }
 0xbfd   :  { %1283 = vmatpush.msra.mxu1 %v1211_v36 }
 0xbff   :  { %1284 = vmatpush.msra.mxu1 %v1210_v37 }
 0xc61   :  { %v920_v38 = vpop.f32.mrf.mxu3 }
 0xc62   :  { %1475 = vmatmul.msk.f32.gmra.mxu1 %vm138_vm8, %v920_v38  ;;  %v1209_v38 = vld [vmem:[#allocation2 + $0x110] sm:$0xff] }
 0xc63   :  { %1285 = vmatpush.msra.mxu1 %v1209_v38 }
 0xc6c   :  { %v1087_v40 = vpop.f32.mrf.mxu3 }
 0xc6d   :  { %1482 = vmatmul.msk.f32.vlgmr.msrb.gmra.mxu0 %vm138_vm8, %v1087_v40  ;;  %v1208_v40 = vld [vmem:[#allocation2 + $0x108] sm:$0xff] }
 0xc6e   :  { %1286 = vmatpush.msra.mxu1 %v1208_v40 }
 0xc7c   :  { %v1113_v41 = vpop.f32.mrf.mxu2 }
 0xc7d   :  { %1483 = vmatmul.msk.f32.gmra.mxu0 %vm138_vm8, %v1113_v41  ;;  %v1207_v41 = vld [vmem:[#allocation2 + $0x100] sm:$0xff] }
 0xc7e   :  { %1287 = vmatpush.msra.mxu1 %v1207_v41  ;;  %v1631_v41 = vmov 8.0  }
 0xcdf   :  { %v953_v49 = vpop.f32.mrf.mxu1 }
 0xce0   :  { %v954_v50 = vadd.f32 %v1518_v42, %v953_v49  ;;  %v1521_v42 = vld [vmem:[%s1948_s3 + $0xa] ss:$0 sm:$0xff] }
 0xcea   :  { %v1141_v47 = vpop.f32.mrf.mxu0 }
 0xceb   :  { %v1147_v45 = vadd.f32 %v1141_v47, %v951_v44 }
 0xced   :  { %v1149_v46 = vadd.f32 %v1147_v45, %v1812_v33 }
 0xcef   :  { %v1153_v48 = vsel %vm42_vm0, %v1149_v46, 0.0 }
 0xcf0   :  { %1154 = vadd.xlane.f32.xlu0 %v1153_v48 }
 0xcfa   :  { %v1144_v62 = vpop.f32.mrf.mxu0 }
 0xcfb   :  { %v1148_v51 = vadd.f32 %v1144_v62, %v954_v50 }
 0xcfd   :  { %v1150_v53 = vadd.f32 %v1148_v51, %v1837_v2  ;;  %v1206_v2 = vld [vmem:[#allocation2 + $0xf8] sm:$0xff] }
 0xcfe   :  { %1235 = vmatpush.msrb.mxu3 %v1206_v2  ;;  %v1522_v2 = vld [vmem:[%s1948_s3 + $0xb] ss:$0 sm:$0xff] }
 0xcff   :  { %v1156_v54 = vsel %vm42_vm0, %v1150_v53, 0.0 }
 0xd00   :  { %1157 = vadd.xlane.f32.xlu2 %v1156_v54  ;;  %1236 = vmatpush.msrb.mxu3 %v1205_v0 }
 0xd02   :  { %1237 = vmatpush.msrb.mxu3 %v1204_v1 }
 0xd04   :  { %1238 = vmatpush.msrb.mxu3 %v1203_v5 }
 0xd63   :  { %v1155_v3 = vpop.xlane.xlu0 %1154 }
 0xd64   :  { %v1159_v55 = vmul.f32 %v1155_v3, %v1673_v10 }
 0xd66   :  { %v1161_v56 = vsub.f32 %v1149_v46, %v1159_v55 }
 0xd68   :  { %v1163_v57 = vmul.f32 %v1161_v56, %v1161_v56 }
 0xd6a   :  { %v1165_v58 = vsel %vm42_vm0, %v1163_v57, 0.0 }
 0xd6b   :  { %1166 = vadd.xlane.f32.xlu1 %v1165_v58 }
 0xd73   :  { %v1158_v33 = vpop.xlane.xlu2 %1157 }
 0xd74   :  { %v1160_v59 = vmul.f32 %v1158_v33, %v1673_v10 }
 0xd76   :  { %v1162_v60 = vsub.f32 %v1150_v53, %v1160_v59 }
 0xd78   :  { %v1164_v61 = vmul.f32 %v1162_v60, %v1162_v60 }
 0xd7a   :  { %v1168_v63 = vsel %vm42_vm0, %v1164_v61, 0.0 }
 0xd7b   :  { %1169 = vadd.xlane.f32.xlu0 %v1168_v63 }
 0xdde   :  { %v1167_v6 = vpop.xlane.xlu1 %1166 }
 0xddf   :  { %v1171_v8 = vmul.f32 %v1167_v6, %v1673_v10 }
 0xde1   :  { %v1173_v9 = vadd.f32 1e-12, %v1171_v8 }
 0xde3   :  { %1578 = vrsqrt.f32 %v1173_v9  ;;  %vm1181_vm9 = vweird.f32 %v1173_v9 }
 0xde9   :  { %v1579_v39 = vpop.eup %1578 }
 0xdea   :  { %v1176_v11 = vmul.f32 %v1579_v39, %v1173_v9  ;;  %vm1182_vm8 = vweird.f32 %v1579_v39 }
 0xdeb   :  { %vm1183_vm3 = vmor %vm1181_vm9, %vm1182_vm8  ;;  %vm1435_vm9 = vcmask 1024  }
 0xdec   :  { %v1177_v4 = vmul.f32 %v1579_v39, %v1176_v11 }
 0xdee   :  { %v1178_v7 = vmul.f32 0.5, %v1177_v4  ;;  %v1170_v12 = vpop.xlane.xlu0 %1169 }
 0xdef   :  { %v1172_v13 = vmul.f32 %v1170_v12, %v1673_v10 }
 0xdf0   :  { %v1179_v14 = vsub.f32 1.5, %v1178_v7 }
 0xdf1   :  { %v1174_v15 = vadd.f32 1e-12, %v1172_v13 }
 0xdf2   :  { %v1180_v16 = vmul.f32 %v1579_v39, %v1179_v14 }
 0xdf3   :  { %1580 = vrsqrt.f32 %v1174_v15  ;;  %vm1191_vm5 = vweird.f32 %v1174_v15 }
 0xdf4   :  { %v1184_v18 = vsel %vm1183_vm3, %v1579_v39, %v1180_v16 }
 0xdf5   :  { %v1195_v19 = vmul.f32 %v1184_v18, %v1161_v56 }
 0xdf7   :  { %v1198_v21 = vmul.f32 %v1519_v17, %v1195_v19 }
 0xdf9   :  { %v1581_v22 = vpop.eup %1580  ;;  %v1201_v23 = vadd.f32 %v1520_v20, %v1198_v21 }
 0xdfa   :  { %v1186_v24 = vmul.f32 %v1581_v22, %v1174_v15  ;;  %vm1192_vm4 = vweird.f32 %v1581_v22 }
 0xdfb   :  { %1487 = vmatmul.msk.f32.vlgmr.msrb.gmra.mxu3 %vm42_vm0, %v1201_v23  ;;  %vm1193_vm6 = vmor %vm1191_vm5, %vm1192_vm4 }
 0xdfc   :  { %v1187_v25 = vmul.f32 %v1581_v22, %v1186_v24 }
 0xdfe   :  { %v1188_v26 = vmul.f32 0.5, %v1187_v25 }
 0xe00   :  { %v1189_v27 = vsub.f32 1.5, %v1188_v26 }
 0xe02   :  { %v1190_v28 = vmul.f32 %v1581_v22, %v1189_v27 }
 0xe04   :  { %v1194_v29 = vsel %vm1193_vm6, %v1581_v22, %v1190_v28 }
 0xe05   :  { %v1196_v30 = vmul.f32 %v1194_v29, %v1162_v60 }
 0xe07   :  { %v1199_v31 = vmul.f32 %v1519_v17, %v1196_v30 }
 0xe09   :  { %v1202_v32 = vadd.f32 %v1520_v20, %v1199_v31 }
 0xe0b   :  { %1488 = vmatmul.msk.f32.gmra.mxu3 %vm42_vm0, %v1202_v32 }
 0xe7e   :  { %v1240_v43 = vpop.f32.mrf.mxu3 }
 0xe7f   :  { %v1241_v44 = vadd.f32 %v1521_v42, %v1240_v43 }
 0xe81   :  { %v1246_v47 = vmul.f32 %v1241_v44, %v1241_v44 }
 0xe83   :  { %v1248_v45 = vmul.f32 %v1246_v47, %v1241_v44 }
 0xe85   :  { %v1250_v46 = vmul.f32 0.044715, %v1248_v45 }
 0xe87   :  { %v1252_v48 = vadd.f32 %v1250_v46, %v1241_v44 }
 0xe89   :  { %v1254_v49 = vmul.f32 0.7978846, %v1252_v48 }
 0xe8b   :  { %1582 = vtanh.f32 %v1254_v49 }
 0xe8e   :  { %v1243_v50 = vpop.f32.mrf.mxu3 }
 0xe8f   :  { %v1244_v62 = vadd.f32 %v1521_v42, %v1243_v50 }
 0xe91   :  { %v1583_v51 = vpop.eup %1582  ;;  %v1247_v53 = vmul.f32 %v1244_v62, %v1244_v62 }
 0xe92   :  { %v1258_v54 = vadd.f32 1.0, %v1583_v51 }
 0xe93   :  { %v1249_v3 = vmul.f32 %v1247_v53, %v1244_v62 }
 0xe94   :  { %v1260_v55 = vmul.f32 0.5, %v1258_v54 }
 0xe95   :  { %v1251_v56 = vmul.f32 0.044715, %v1249_v3 }
 0xe96   :  { %v1262_v57 = vmul.f32 %v1260_v55, %v1241_v44 }
 0xe97   :  { %v1253_v58 = vadd.f32 %v1251_v56, %v1244_v62 }
 0xe98   :  { %1490 = vmatmul.msk.f32.vlgmr.msra.gmra.mxu1 %vm644_vm1, %v1262_v57 }
 0xe99   :  { %v1255_v33 = vmul.f32 0.7978846, %v1253_v58 }
 0xe9b   :  { %1584 = vtanh.f32 %v1255_v33 }
 0xea1   :  { %v1585_v59 = vpop.eup %1584 }
 0xea2   :  { %v1259_v60 = vadd.f32 1.0, %v1585_v59 }
 0xea4   :  { %v1261_v61 = vmul.f32 0.5, %v1259_v60 }
 0xea6   :  { %v1263_v63 = vmul.f32 %v1261_v61, %v1244_v62 }
 0xea8   :  { %1491 = vmatmul.msk.f32.gmra.mxu1 %vm644_vm1, %v1263_v63 }
 0xf15   :  { %v1289_v0 = vpop.f32.mrf.mxu1 }
 0xf16   :  { %v1290_v1 = vadd.f32 %v1522_v2, %v1289_v0 }
 0xf18   :  { %v1295_v5 = vadd.f32 %v1290_v1, %v1201_v23 }
 0xf1a   :  { %v1299_v6 = vsel %vm42_vm0, %v1295_v5, 0.0 }
 0xf1b   :  { %1300 = vadd.xlane.f32.xlu0 %v1299_v6 }
 0xf25   :  { %v1292_v8 = vpop.f32.mrf.mxu1 }
 0xf26   :  { %v1293_v9 = vadd.f32 %v1522_v2, %v1292_v8 }
 0xf28   :  { %v1296_v39 = vadd.f32 %v1293_v9, %v1202_v32  ;;  %v1523_v32 = vld [vmem:[%s1948_s3 + $0xe] ss:$0 sm:$0xff] }
 0xf2a   :  { %v1302_v11 = vsel %vm42_vm0, %v1296_v39, 0.0 }
 0xf2b   :  { %1303 = vadd.xlane.f32.xlu2 %v1302_v11 }
 0xf8e   :  { %v1301_v4 = vpop.xlane.xlu0 %1300 }
 0xf8f   :  { %v1305_v7 = vmul.f32 %v1301_v4, %v1673_v10 }
 0xf91   :  { %v1307_v12 = vsub.f32 %v1295_v5, %v1305_v7 }
 0xf93   :  { %v1309_v13 = vmul.f32 %v1307_v12, %v1307_v12 }
 0xf95   :  { %v1311_v14 = vsel %vm42_vm0, %v1309_v13, 0.0 }
 0xf96   :  { %1312 = vadd.xlane.f32.xlu2 %v1311_v14 }
 0xf9e   :  { %v1304_v15 = vpop.xlane.xlu2 %1303 }
 0xf9f   :  { %v1306_v16 = vmul.f32 %v1304_v15, %v1673_v10 }
 0xfa1   :  { %v1308_v17 = vsub.f32 %v1296_v39, %v1306_v16 }
 0xfa3   :  { %v1310_v18 = vmul.f32 %v1308_v17, %v1308_v17 }
 0xfa5   :  { %v1314_v19 = vsel %vm42_vm0, %v1310_v18, 0.0  ;;  %v1525_v18 = vld [vmem:[%s1949_s4 + $0x3] ss:$0 sm:$0xff] }
 0xfa6   :  { %1315 = vadd.xlane.f32.xlu1 %v1314_v19 }
0x1009   :  { %v1313_v20 = vpop.xlane.xlu2 %1312 }
0x100a   :  { %v1317_v21 = vmul.f32 %v1313_v20, %v1673_v10 }
0x100c   :  { %v1319_v22 = vadd.f32 1e-12, %v1317_v21 }
0x100e   :  { %1586 = vrsqrt.f32 %v1319_v22  ;;  %vm1327_vm7 = vweird.f32 %v1319_v22 }
0x1014   :  { %v1587_v23 = vpop.eup %1586 }
0x1015   :  { %v1322_v24 = vmul.f32 %v1587_v23, %v1319_v22  ;;  %vm1328_vm1 = vweird.f32 %v1587_v23 }
0x1016   :  { %vm1329_vm10 = vmor %vm1327_vm7, %vm1328_vm1 }
0x1017   :  { %v1323_v25 = vmul.f32 %v1587_v23, %v1322_v24 }
0x1019   :  { %v1324_v26 = vmul.f32 0.5, %v1323_v25  ;;  %v1316_v27 = vpop.xlane.xlu1 %1315 }
0x101a   :  { %v1318_v28 = vmul.f32 %v1316_v27, %v1673_v10 }
0x101b   :  { %v1325_v29 = vsub.f32 1.5, %v1324_v26 }
0x101c   :  { %v1320_v30 = vadd.f32 1e-12, %v1318_v28 }
0x101d   :  { %v1326_v31 = vmul.f32 %v1587_v23, %v1325_v29 }
0x101e   :  { %1588 = vrsqrt.f32 %v1320_v30  ;;  %vm1337_vm12 = vweird.f32 %v1320_v30 }
0x101f   :  { %v1330_v52 = vsel %vm1329_vm10, %v1587_v23, %v1326_v31  ;;  %1590 = vrcp.f32 %v1631_v41  ;;  %v1526_v23 = vld [vmem:[%s1949_s4 + $0x2] ss:$0 sm:$0xff] }
0x1020   :  { %v1341_v35 = vmul.f32 %v1330_v52, %v1307_v12  ;;  %v1527_v52 = vld [vmem:[%s1949_s4 + $0x4] ss:$0 sm:$0xff] }
0x1022   :  { %v1344_v36 = vmul.f32 %v1523_v32, %v1341_v35 }
0x1024   :  { %v1589_v37 = vpop.eup %1588  ;;  %v1347_v10 = vadd.f32 %v1524_v34, %v1344_v36 }
0x1025   :  { %v1332_v38 = vmul.f32 %v1589_v37, %v1320_v30  ;;  %vm1338_vm11 = vweird.f32 %v1589_v37  ;;  %v1591_v46 = vpop.eup %1590 }
0x1026   :  { %v1349_v42 = vsel %vm42_vm0, %v1347_v10, 0.0  ;;  %v1372_v44 = vsel %vm42_vm0, %v1347_v10, -inf  ;;  %vm1339_vm13 = vmor %vm1337_vm12, %vm1338_vm11  ;;  %v1364_v53 = vmul.f32 8.0, %v1591_v46  ;;  %vm1368_vm14 = vweird.f32 %v1591_v46 }
0x1027   :  { %v1333_v40 = vmul.f32 %v1589_v37, %v1332_v38  ;;  %v1350_v45 = vrot.slane %v1349_v42, 4  ;;  %v1373_v49 = vrot.slane %v1372_v44, 4 }
0x1028   :  { %v1365_v57 = vsub.f32 1.0, %v1364_v53 }
0x1029   :  { %v1334_v43 = vmul.f32 0.5, %v1333_v40  ;;  %v1351_v62 = vadd.f32 %v1350_v45, %v1349_v42  ;;  %v1374_v54 = vmax.f32 %v1372_v44, %v1373_v49 }
0x102a   :  { %v1366_v2 = vmul.f32 %v1591_v46, %v1365_v57 }
0x102b   :  { %v1335_v47 = vsub.f32 1.5, %v1334_v43  ;;  %v1352_v55 = vrot.slane %v1351_v62, 2  ;;  %v1375_v58 = vrot.slane %v1374_v54, 2 }
0x102c   :  { %v1367_v39 = vadd.f32 %v1591_v46, %v1366_v2 }
0x102d   :  { %v1336_v48 = vmul.f32 %v1589_v37, %v1335_v47  ;;  %v1353_v61 = vadd.f32 %v1352_v55, %v1351_v62  ;;  %v1376_v0 = vmax.f32 %v1374_v54, %v1375_v58 }
0x102e   :  { %v1369_v15 = vsel %vm1368_vm14, %v1591_v46, %v1367_v39 }
0x102f   :  { %v1340_v50 = vsel %vm1339_vm13, %v1589_v37, %v1336_v48  ;;  %v1354_v8 = vrot.slane %v1353_v61, 1  ;;  %v1377_v11 = vrot.slane %v1376_v0, 1 }
0x1030   :  { %v1342_v51 = vmul.f32 %v1340_v50, %v1308_v17 }
0x1031   :  { %v1355_v13 = vadd.f32 %v1354_v8, %v1353_v61  ;;  %v1378_v16 = vmax.f32 %v1376_v0, %v1377_v11 }
0x1032   :  { %v1345_v3 = vmul.f32 %v1523_v32, %v1342_v51 }
0x1033   :  { %v1370_v21 = vmul.f32 %v1369_v15, %v1355_v13  ;;  %v1402_v24 = vmul.f32 %v1525_v18, %v1378_v16 }
0x1034   :  { %v1348_v56 = vadd.f32 %v1524_v34, %v1345_v3 }
0x1035   :  { %v1388_v28 = vmul.f32 %v1526_v23, %v1370_v21 }
0x1036   :  { %v1379_v33 = vsel %vm42_vm0, %v1348_v56, -inf  ;;  %v1356_v59 = vsel %vm42_vm0, %v1348_v56, 0.0  ;;  %vm1393_vm0 = vcmask 1041409  }
0x1037   :  { %v1380_v60 = vrot.slane %v1379_v33, 4  ;;  %v1357_v63 = vrot.slane %v1356_v59, 4 }
0x1039   :  { %v1381_v1 = vmax.f32 %v1379_v33, %v1380_v60  ;;  %v1358_v5 = vadd.f32 %v1357_v63, %v1356_v59 }
0x103b   :  { %v1382_v6 = vrot.slane %v1381_v1, 2  ;;  %v1359_v9 = vrot.slane %v1358_v5, 2 }
0x103d   :  { %v1383_v4 = vmax.f32 %v1381_v1, %v1382_v6  ;;  %v1360_v7 = vadd.f32 %v1359_v9, %v1358_v5 }
0x103f   :  { %v1384_v12 = vrot.slane %v1383_v4, 1  ;;  %v1361_v14 = vrot.slane %v1360_v7, 1 }
0x1041   :  { %v1385_v17 = vmax.f32 %v1383_v4, %v1384_v12  ;;  %v1362_v19 = vadd.f32 %v1361_v14, %v1360_v7 }
0x1043   :  { %v1403_v20 = vmul.f32 %v1525_v18, %v1385_v17  ;;  %v1371_v22 = vmul.f32 %v1369_v15, %v1362_v19 }
0x1045   :  { %v1406_v25 = vrot.slane %v1403_v20, 7  ;;  %v1389_v26 = vmul.f32 %v1526_v23, %v1371_v22 }
0x1047   :  { %v1407_v27 = vsel %vm1393_vm0, %v1406_v25, %v1402_v24  ;;  %v1392_v29 = vrot.slane %v1389_v26, 7 }
0x1048   :  { %v1409_v30 = vsel %vm1396_vm15, %v1407_v27, 0.0 }
0x1049   :  { %1410 = vadd.xlane.f32.xlu1 %v1409_v30  ;;  %v1394_v31 = vsel %vm1393_vm0, %v1392_v29, %v1388_v28 }
0x104a   :  { %v1397_v32 = vsel %vm1396_vm15, %v1394_v31, 0.0 }
0x104b   :  { %1398 = vadd.xlane.f32.xlu0 %v1397_v32 }
0x10bc   :  { %v1411_v34 = vpop.xlane.xlu1 %1410 }
0x10be   :  { %v1399_v35 = vpop.xlane.xlu0 %1398 }
0x10bf   :  { %v1412_v36 = vadd.f32 %v1411_v34, %v1399_v35 }
0x10c1   :  { %v1415_v37 = vadd.f32 %v1527_v52, %v1412_v36 }
0x10c3   :  { %v1494_v10 = vmul.f32 -1.442695, %v1415_v37 }
0x10c5   :  { %1592 = vpow2.f32 %v1494_v10 }
0x10cb   :  { %v1593_v38 = vpop.eup %1592 }
0x10cc   :  { %v1419_v40 = vadd.f32 1.0, %v1593_v38 }
0x10ce   :  { %1594 = vrcp.f32 %v1419_v40  ;;  %v1431_v44 = vand.u32 2147483648, %v1419_v40  ;;  %v1429_v45 = vand.u32 2147483647, %v1419_v40  ;;  %vm1425_vm8 = vweird.f32 %v1419_v40 }
0x10d0   :  { %v1432_v48 = vor.u32 1.1754944e-38, %v1431_v44  ;;  %vm1430_vm4 = vcmp.eq.f32.partialorder %v1429_v45, 8.507059e+37 }
0x10d4   :  { %v1595_v41 = vpop.eup %1594 }
0x10d5   :  { %v1421_v42 = vmul.f32 %v1595_v41, %v1419_v40  ;;  %vm1426_vm2 = vweird.f32 %v1595_v41 }
0x10d6   :  { %vm1427_vm3 = vmor %vm1425_vm8, %vm1426_vm2 }
0x10d7   :  { %v1422_v43 = vsub.f32 1.0, %v1421_v42 }
0x10d9   :  { %v1423_v47 = vmul.f32 %v1595_v41, %v1422_v43 }
0x10db   :  { %v1424_v46 = vadd.f32 %v1595_v41, %v1423_v47 }
0x10dd   :  { %v1428_v49 = vsel %vm1427_vm3, %v1595_v41, %v1424_v46 }
0x10de   :  { %v1433_v50 = vsel %vm1430_vm4, %v1432_v48, %v1428_v49 }
0x10df   :  { %1436 = vst.msk [vmem:[%s1950_s5] sm:$0x3] %vm1435_vm9, %v1433_v50 }
0x10e0   :  { %1441 = vsyncpa [#allocation3], 1 }

</bundles_post_ra>
